<compile_context>
chip_gen: v5e
topology: v5e:2x2
jax: 0.10.0
libtpu: 0.0.40
codegen_flags: <defaults>
</compile_context>

<pallas_src>
import functools

import jax
import jax.numpy as jnp
from jax import lax
from jax.experimental import pallas as pl
from jax.experimental.pallas import tpu as pltpu
import numpy as np


def _vq_kernel(x_ref, e_ref, et_ref, esq_ref,        # inputs
               q_ref, idx_ref, err_ref,               # outputs
               best_ref, qacc_ref,                    # scratch
               *, s_valid):
    """Grid step (b, j, kc): spatial tile j of batch b vs. codebook chunk kc."""
    j = pl.program_id(1)
    kc = pl.program_id(2)
    nk = pl.num_programs(2)

    x = x_ref[0]                        # (C, tn)  channels on sublanes, positions on lanes
    e = e_ref[...]                      # (tk, C)  codebook chunk
    et = et_ref[...]                    # (C, tk)  codebook chunk, transposed
    esq = esq_ref[...]                  # (tk, 1)  0.5*||e_k||^2, f32 (+inf on padded rows)
    tk, _ = e.shape
    tn = x.shape[1]

    # Distances for this chunk:  argmin_k ||x - e_k||^2 == argmin_k (0.5||e_k||^2 - e_k.x)
    # (per-position ||x||^2 dropped, factor 2 folded into the hoisted norm).
    xe = jnp.dot(e, x, preferred_element_type=jnp.float32)     # (tk, tn)  MXU
    dist = esq - xe                                            # (tk, tn)  f32

    # Chunk-local argmin over codes (sublane direction), first occurrence on ties.
    sub_iota = lax.broadcasted_iota(jnp.int32, (tk, tn), 0)
    chunk_min = jnp.min(dist, axis=0, keepdims=True)                        # (1, tn)
    local = jnp.min(jnp.where(dist == chunk_min, sub_iota, tk),
                    axis=0, keepdims=True)                                  # (1, tn) int32

    # Running best across codebook chunks.  Strict '<' keeps earlier chunks on ties
    # (matches torch.argmin first-occurrence); kc==0 unconditionally overwrites stale scratch.
    improved = jnp.logical_or(kc == 0, chunk_min < best_ref[...])           # (1, tn) bool
    best_ref[...] = jnp.where(improved, chunk_min, best_ref[...])

    # Gather this chunk's best code per position via a one-hot matmul (exact selection),
    # blend into the running result only where this chunk improved.
    onehot = (sub_iota == local).astype(et.dtype)                           # (tk, tn)
    q_chunk = jnp.dot(et, onehot, preferred_element_type=jnp.float32)       # (C, tn)  MXU
    qacc_ref[...] = jnp.where(improved, q_chunk, qacc_ref[...])

    idx_new = kc * tk + local                                               # (1, tn) int32
    idx_ref[0] = jnp.where(improved, idx_new, idx_ref[0])

    @pl.when(kc == nk - 1)
    def _finalize():
        q_ref[0] = qacc_ref[...].astype(q_ref.dtype)
        d = x.astype(jnp.float32) - qacc_ref[...]
        if s_valid is not None:                       # ragged trailing spatial block
            lane = lax.broadcasted_iota(jnp.int32, (1, tn), 1)
            d = jnp.where(j * tn + lane < s_valid, d, 0.0)
        err_ref[...] = jnp.sum(d * d).reshape(err_ref.shape)


def _pick_tile(dim, want, align):
    """Full dim if it fits in one block, else the largest `align`-multiple <= want."""
    if dim <= want:
        return dim
    t = max(align, (want // align) * align)
    return dim if t >= dim else t


def codebook_forward(z, embeddings, *, tn=512, tk=1024, vmem_limit_bytes=None):
    """Inference forward of Codebook.forward (training-only branches excluded).

    z:          (B, C, T, H, W), C == embedding_dim (channels-first, as in PyTorch)
    embeddings: (n_codes, embedding_dim)
    tn: spatial positions per tile (lane dim).  v5e/v6e may raise to 1024-2048 (with
        vmem_limit_bytes bumped); keep <= 512 on v7x (64 MiB VMEM, 2 TensorCores).
    tk: codebook rows per chunk; bounds VMEM for large n_codes.
    """
    B, C, T, H, W = z.shape
    K, C2 = embeddings.shape
    assert C == C2, "channel dim of z must equal embedding_dim"
    S = T * H * W
    N = B * S

    # channels-first consumed directly: a free reshape, no moveaxis HBM round trip
    x = z.reshape(B, C, S)

    tn_eff = _pick_tile(S, tn, 128)
    tk_eff = _pick_tile(K, tk, 128)
    gs = pl.cdiv(S, tn_eff)
    gk = pl.cdiv(K, tk_eff)
    k_pad = gk * tk_eff

    # loop-invariant codebook quantities, hoisted out of the kernel
    emb_f32 = embeddings.astype(jnp.float32)
    esq_half = 0.5 * jnp.sum(emb_f32 * emb_f32, axis=1, keepdims=True)      # (K, 1) f32
    e = embeddings                                                          # (K, C)
    e_t = jnp.swapaxes(embeddings, 0, 1)                                    # (C, K)
    if k_pad != K:
        # pad codes with zero rows and +inf half-norm -> distance +inf, never selected
        e = jnp.pad(e, ((0, k_pad - K), (0, 0)))
        e_t = jnp.pad(e_t, ((0, 0), (0, k_pad - K)))
        esq_half = jnp.pad(esq_half, ((0, k_pad - K), (0, 0)),
                           constant_values=float("inf"))

    kernel = functools.partial(_vq_kernel,
                               s_valid=(S if S % tn_eff else None))

    cp = dict(dimension_semantics=("parallel", "parallel", "arbitrary"))
    if vmem_limit_bytes is not None:
        cp["vmem_limit_bytes"] = vmem_limit_bytes

    q, idx, err = pl.pallas_call(
        kernel,
        out_shape=(
            jax.ShapeDtypeStruct((B, C, S), z.dtype),          # quantized, channels-first
            jax.ShapeDtypeStruct((B, 1, S), jnp.int32),        # encodings, lane-dense
            jax.ShapeDtypeStruct((B, gs, 1, 1), jnp.float32),  # per-tile sum (z - q)^2
        ),
        grid_spec=pltpu.PrefetchScalarGridSpec(
            num_scalar_prefetch=0,
            grid=(B, gs, gk),
            in_specs=[
                pl.BlockSpec((1, C, tn_eff), lambda b, j, kc: (b, 0, j)),   # x tile (inv. in kc)
                pl.BlockSpec((tk_eff, C), lambda b, j, kc: (kc, 0)),        # codebook chunk
                pl.BlockSpec((C, tk_eff), lambda b, j, kc: (0, kc)),        # codebook^T chunk
                pl.BlockSpec((tk_eff, 1), lambda b, j, kc: (kc, 0)),        # 0.5*||e||^2 chunk
            ],
            out_specs=[
                pl.BlockSpec((1, C, tn_eff), lambda b, j, kc: (b, 0, j)),
                pl.BlockSpec((1, 1, tn_eff), lambda b, j, kc: (b, 0, j)),
                pl.BlockSpec((1, 1, 1, 1), lambda b, j, kc: (b, j, 0, 0)),
            ],
            scratch_shapes=[
                pltpu.VMEM((1, tn_eff), jnp.float32),   # running min distance per position
                pltpu.VMEM((C, tn_eff), jnp.float32),   # running selected code (f32)
            ],
        ),
        compiler_params=pltpu.CompilerParams(**cp),
    )(x, e, e_t, esq_half)

    quant = q.reshape(B, C, T, H, W)
    encodings = idx.reshape(B, T, H, W)
    commitment_loss = 0.25 * jnp.sum(err) / (N * C)            # == 0.25 * mse(z, quant)
    embeddings_st = z + lax.stop_gradient(quant - z)           # straight-through estimator

    # code-usage statistics from the emitted indices (O(N) int32, tiny vs. the (N, C) tensors)
    counts = jnp.zeros((K,), jnp.float32).at[idx.reshape(-1)].add(1.0)
    avg_probs = counts / N
    perplexity = jnp.exp(-jnp.sum(avg_probs * jnp.log(avg_probs + 1e-10)))

    return dict(
        embeddings=embeddings_st,
        encodings=encodings,
        commitment_loss=commitment_loss,
        perplexity=perplexity,
    )


def _reference_forward(z, embeddings):
    """Pure-JAX reference mirroring the PyTorch forward (eval mode)."""
    B, C, T, H, W = z.shape
    K = embeddings.shape[0]
    flat = jnp.moveaxis(z, 1, -1).reshape(-1, C)
    dist = (jnp.sum(flat ** 2, axis=1, keepdims=True)
            - 2.0 * flat @ embeddings.T
            + jnp.sum(embeddings ** 2, axis=1)[None, :])
    idx = jnp.argmin(dist, axis=1)
    onehot = jax.nn.one_hot(idx, K, dtype=flat.dtype)
    q_flat = embeddings[idx]
    quant = jnp.moveaxis(q_flat.reshape(B, T, H, W, C), -1, 1)
    commitment_loss = 0.25 * jnp.mean((z - quant) ** 2)
    embeddings_st = (quant - z) + z
    avg_probs = jnp.mean(onehot, axis=0)
    perplexity = jnp.exp(-jnp.sum(avg_probs * jnp.log(avg_probs + 1e-10)))
    return dict(embeddings=embeddings_st, encodings=idx.reshape(B, T, H, W),
                commitment_loss=commitment_loss, perplexity=perplexity)


if __name__ == "__main__":
    # Small shapes consistent with the 3D VQ-GAN codebook: z is (B, embedding_dim, T, H, W)
    n_codes, embedding_dim = 192, 32
    B, T, H, W = 2, 4, 8, 10            # S = 320 spatial positions per batch, N = 640

    key = jax.random.PRNGKey(0)
    kz, ke = jax.random.split(key)
    z = jax.random.normal(kz, (B, embedding_dim, T, H, W), dtype=jnp.float32)
    # deterministic stand-in for the randn codebook buffer
    embeddings = jax.random.normal(ke, (n_codes, embedding_dim), dtype=jnp.float32)

    ref = jax.block_until_ready(_reference_forward(z, embeddings))

    # (tn, tk) configs: single block / ragged spatial tiles + chunked & padded codebook /
    # many small tiles with a single full codebook chunk.
    for tn, tk in ((512, 1024), (256, 128), (128, 192)):
        out = jax.block_until_ready(codebook_forward(z, embeddings, tn=tn, tk=tk))
        np.testing.assert_array_equal(np.asarray(out["encodings"]),
                                      np.asarray(ref["encodings"]))
        np.testing.assert_allclose(np.asarray(out["embeddings"]),
                                   np.asarray(ref["embeddings"]),
                                   rtol=1e-5, atol=1e-5)
        np.testing.assert_allclose(float(out["commitment_loss"]),
                                   float(ref["commitment_loss"]),
                                   rtol=1e-5, atol=1e-6)
        np.testing.assert_allclose(float(out["perplexity"]),
                                   float(ref["perplexity"]),
                                   rtol=1e-5, atol=1e-5)

    print("KERNEL_OK")
</pallas_src>

<mosaic_0001>
module attributes {stable_mosaic.version = 11 : i64} {
  func.func @_vq_kernel(%arg0: i32, %arg1: i32, %arg2: i32, %arg3: memref<1x32x320xf32, #tpu.memory_space<vmem>>, %arg4: memref<192x32xf32, #tpu.memory_space<vmem>>, %arg5: memref<32x192xf32, #tpu.memory_space<vmem>>, %arg6: memref<192x1xf32, #tpu.memory_space<vmem>>, %arg7: memref<1x32x320xf32, #tpu.memory_space<vmem>>, %arg8: memref<1x1x320xi32, #tpu.memory_space<vmem>>, %arg9: memref<1x1x1x1xf32, #tpu.memory_space<vmem>>, %arg10: memref<1x320xf32, #tpu.memory_space<vmem>>, %arg11: memref<32x320xf32, #tpu.memory_space<vmem>>) attributes {dimension_semantics = [#tpu.dimension_semantics<parallel>, #tpu.dimension_semantics<parallel>, #tpu.dimension_semantics<arbitrary>], iteration_bounds = array<i64: 2, 1, 1>, scalar_prefetch = 0 : i64, scratch_operands = 2 : i64, tpu.core_type = #tpu.core_type<tc>, window_params = [{transform_indices = @transform_0, window_bounds = array<i64: 1, 32, 320>}, {transform_indices = @transform_1, window_bounds = array<i64: 192, 32>}, {transform_indices = @transform_2, window_bounds = array<i64: 32, 192>}, {transform_indices = @transform_3, window_bounds = array<i64: 192, 1>}, {transform_indices = @transform_4, window_bounds = array<i64: 1, 32, 320>}, {transform_indices = @transform_5, window_bounds = array<i64: 1, 1, 320>}, {transform_indices = @transform_6, window_bounds = array<i64: 1, 1, 1, 1>}]} {
    %c0 = arith.constant 0 : index
    %c0_0 = arith.constant 0 : index
    %c0_1 = arith.constant 0 : index
    %0 = vector.load %arg3[%c0, %c0_0, %c0_1] : memref<1x32x320xf32, #tpu.memory_space<vmem>>, vector<1x32x320xf32>
    %1 = vector.shape_cast %0 : vector<1x32x320xf32> to vector<32x320xf32>
    %c0_2 = arith.constant 0 : index
    %c0_3 = arith.constant 0 : index
    %2 = vector.load %arg4[%c0_2, %c0_3] : memref<192x32xf32, #tpu.memory_space<vmem>>, vector<192x32xf32>
    %c0_4 = arith.constant 0 : index
    %c0_5 = arith.constant 0 : index
    %3 = vector.load %arg5[%c0_4, %c0_5] : memref<32x192xf32, #tpu.memory_space<vmem>>, vector<32x192xf32>
    %c0_6 = arith.constant 0 : index
    %c0_7 = arith.constant 0 : index
    %4 = vector.load %arg6[%c0_6, %c0_7] : memref<192x1xf32, #tpu.memory_space<vmem>>, vector<192x1xf32>
    %cst = arith.constant dense<0.000000e+00> : vector<192x320xf32>
    %5 = tpu.matmul %2, %1, %cst {dimension_numbers = #tpu.dot_dimension_numbers<[1], [0], [0], [1], [0, 0, 1, 1], [], []>} : vector<192x32xf32>, vector<32x320xf32>, vector<192x320xf32> -> vector<192x320xf32>
    %6 = vector.broadcast %4 : vector<192x1xf32> to vector<192x320xf32>
    %7 = arith.subf %6, %5 : vector<192x320xf32>
    %8 = tpu.iota {dimensions = array<i32: 0>} : vector<192x320xi32>
    %cst_8 = arith.constant dense<0x7F800000> : vector<320xf32>
    %9 = vector.multi_reduction <minimumf>, %7, %cst_8 [0] : vector<192x320xf32> to vector<320xf32>
    %10 = vector.shape_cast %9 : vector<320xf32> to vector<1x320xf32>
    %11 = vector.broadcast %10 : vector<1x320xf32> to vector<192x320xf32>
    %12 = arith.cmpf oeq, %7, %11 : vector<192x320xf32>
    %c192_i32 = arith.constant 192 : i32
    %13 = vector.broadcast %c192_i32 : i32 to vector<192x320xi32>
    %14 = arith.select %12, %8, %13 : vector<192x320xi1>, vector<192x320xi32>
    %cst_9 = arith.constant dense<2147483647> : vector<320xi32>
    %15 = vector.multi_reduction <minsi>, %14, %cst_9 [0] : vector<192x320xi32> to vector<320xi32>
    %16 = vector.shape_cast %15 : vector<320xi32> to vector<1x320xi32>
    %c0_i32 = arith.constant 0 : i32
    %17 = arith.cmpi eq, %arg2, %c0_i32 : i32
    %c0_10 = arith.constant 0 : index
    %c0_11 = arith.constant 0 : index
    %18 = vector.load %arg10[%c0_10, %c0_11] : memref<1x320xf32, #tpu.memory_space<vmem>>, vector<1x320xf32>
    %19 = arith.cmpf olt, %10, %18 : vector<1x320xf32>
    %20 = vector.broadcast %17 : i1 to vector<1x320xi1>
    %21 = arith.ori %20, %19 : vector<1x320xi1>
    %c0_12 = arith.constant 0 : index
    %c0_13 = arith.constant 0 : index
    %22 = vector.load %arg10[%c0_12, %c0_13] : memref<1x320xf32, #tpu.memory_space<vmem>>, vector<1x320xf32>
    %23 = arith.select %21, %10, %22 : vector<1x320xi1>, vector<1x320xf32>
    %c0_14 = arith.constant 0 : index
    %c0_15 = arith.constant 0 : index
    %24 = vector.load %arg10[%c0_14, %c0_15] : memref<1x320xf32, #tpu.memory_space<vmem>>, vector<1x320xf32>
    tpu.vector_store %arg10[%c0_14, %c0_15], %23 {strides = array<i32>} : memref<1x320xf32, #tpu.memory_space<vmem>>, vector<1x320xf32>,
    %25 = vector.broadcast %16 : vector<1x320xi32> to vector<192x320xi32>
    %26 = arith.cmpi eq, %8, %25 : vector<192x320xi32>
    %27 = arith.extui %26 : vector<192x320xi1> to vector<192x320xi32>
    %28 = arith.sitofp %27 : vector<192x320xi32> to vector<192x320xf32>
    %cst_16 = arith.constant dense<0.000000e+00> : vector<32x320xf32>
    %29 = tpu.matmul %3, %28, %cst_16 {dimension_numbers = #tpu.dot_dimension_numbers<[1], [0], [0], [1], [0, 0, 1, 1], [], []>} : vector<32x192xf32>, vector<192x320xf32>, vector<32x320xf32> -> vector<32x320xf32>
    %c0_17 = arith.constant 0 : index
    %c0_18 = arith.constant 0 : index
    %30 = vector.load %arg11[%c0_17, %c0_18] : memref<32x320xf32, #tpu.memory_space<vmem>>, vector<32x320xf32>
    %31 = vector.shape_cast %21 : vector<1x320xi1> to vector<1x320xi1>
    %32 = vector.broadcast %31 : vector<1x320xi1> to vector<32x320xi1>
    %33 = arith.select %32, %29, %30 : vector<32x320xi1>, vector<32x320xf32>
    %c0_19 = arith.constant 0 : index
    %c0_20 = arith.constant 0 : index
    %34 = vector.load %arg11[%c0_19, %c0_20] : memref<32x320xf32, #tpu.memory_space<vmem>>, vector<32x320xf32>
    tpu.vector_store %arg11[%c0_19, %c0_20], %33 {strides = array<i32>} : memref<32x320xf32, #tpu.memory_space<vmem>>, vector<32x320xf32>,
    %c192_i32_21 = arith.constant 192 : i32
    %35 = arith.muli %arg2, %c192_i32_21 : i32
    %36 = vector.broadcast %35 : i32 to vector<1x320xi32>
    %37 = arith.addi %36, %16 : vector<1x320xi32>
    %c0_22 = arith.constant 0 : index
    %c0_23 = arith.constant 0 : index
    %c0_24 = arith.constant 0 : index
    %38 = vector.load %arg8[%c0_22, %c0_23, %c0_24] : memref<1x1x320xi32, #tpu.memory_space<vmem>>, vector<1x1x320xi32>
    %39 = vector.shape_cast %38 : vector<1x1x320xi32> to vector<1x320xi32>
    %40 = arith.select %21, %37, %39 : vector<1x320xi1>, vector<1x320xi32>
    %c0_25 = arith.constant 0 : index
    %c0_26 = arith.constant 0 : index
    %c0_27 = arith.constant 0 : index
    %41 = vector.load %arg8[%c0_25, %c0_26, %c0_27] : memref<1x1x320xi32, #tpu.memory_space<vmem>>, vector<1x1x320xi32>
    %42 = vector.shape_cast %41 : vector<1x1x320xi32> to vector<1x320xi32>
    %43 = vector.shape_cast %40 : vector<1x320xi32> to vector<1x1x320xi32>
    tpu.vector_store %arg8[%c0_25, %c0_26, %c0_27], %43 {strides = array<i32>} : memref<1x1x320xi32, #tpu.memory_space<vmem>>, vector<1x1x320xi32>,
    %c0_i32_28 = arith.constant 0 : i32
    %44 = arith.cmpi eq, %arg2, %c0_i32_28 : i32
    %45 = arith.extui %44 : i1 to i32
    %c0_i32_29 = arith.constant 0 : i32
    %46 = arith.cmpi ne, %45, %c0_i32_29 : i32
    scf.if %46 {
      %c0_30 = arith.constant 0 : index
      %c0_31 = arith.constant 0 : index
      %47 = vector.load %arg11[%c0_30, %c0_31] : memref<32x320xf32, #tpu.memory_space<vmem>>, vector<32x320xf32>
      %c0_32 = arith.constant 0 : index
      %c0_33 = arith.constant 0 : index
      %c0_34 = arith.constant 0 : index
      %48 = vector.load %arg7[%c0_32, %c0_33, %c0_34] : memref<1x32x320xf32, #tpu.memory_space<vmem>>, vector<1x32x320xf32>
      %49 = vector.shape_cast %48 : vector<1x32x320xf32> to vector<32x320xf32>
      %50 = vector.shape_cast %47 : vector<32x320xf32> to vector<1x32x320xf32>
      tpu.vector_store %arg7[%c0_32, %c0_33, %c0_34], %50 {strides = array<i32>} : memref<1x32x320xf32, #tpu.memory_space<vmem>>, vector<1x32x320xf32>,
      %c0_35 = arith.constant 0 : index
      %c0_36 = arith.constant 0 : index
      %51 = vector.load %arg11[%c0_35, %c0_36] : memref<32x320xf32, #tpu.memory_space<vmem>>, vector<32x320xf32>
      %52 = arith.subf %1, %51 : vector<32x320xf32>
      %53 = arith.mulf %52, %52 : vector<32x320xf32>
      %54 = vector.shape_cast %53 : vector<32x320xf32> to vector<1x32x320xf32>
      %cst_37 = arith.constant dense<0.000000e+00> : vector<1xf32>
      %55 = vector.multi_reduction <add>, %54, %cst_37 [1, 2] : vector<1x32x320xf32> to vector<1xf32>
      %56 = vector.shape_cast %55 : vector<1xf32> to vector<1x1x1xf32>
      %57 = vector.extract %56[0, 0, 0] : f32 from vector<1x1x1xf32>
      %58 = vector.broadcast %57 : f32 to vector<1x1x1x1xf32>
      %c0_38 = arith.constant 0 : index
      %c0_39 = arith.constant 0 : index
      %c0_40 = arith.constant 0 : index
      %c0_41 = arith.constant 0 : index
      %59 = vector.load %arg9[%c0_38, %c0_39, %c0_40, %c0_41] : memref<1x1x1x1xf32, #tpu.memory_space<vmem>>, vector<1x1x1x1xf32>
      tpu.vector_store %arg9[%c0_38, %c0_39, %c0_40, %c0_41], %58 {strides = array<i32>} : memref<1x1x1x1xf32, #tpu.memory_space<vmem>>, vector<1x1x1x1xf32>,
    } else {
    }
    return
  }
  func.func @transform_0(%arg0: i32, %arg1: i32, %arg2: i32) -> (i32, i32, i32) {
    %c0_i32 = arith.constant 0 : i32
    %c0_i32_0 = arith.constant 0 : i32
    return %arg0, %c0_i32, %arg1 : i32, i32, i32
  }
  func.func @transform_1(%arg0: i32, %arg1: i32, %arg2: i32) -> (i32, i32) {
    %c0_i32 = arith.constant 0 : i32
    %c0_i32_0 = arith.constant 0 : i32
    return %arg2, %c0_i32 : i32, i32
  }
  func.func @transform_2(%arg0: i32, %arg1: i32, %arg2: i32) -> (i32, i32) {
    %c0_i32 = arith.constant 0 : i32
    %c0_i32_0 = arith.constant 0 : i32
    return %c0_i32, %arg2 : i32, i32
  }
  func.func @transform_3(%arg0: i32, %arg1: i32, %arg2: i32) -> (i32, i32) {
    %c0_i32 = arith.constant 0 : i32
    %c0_i32_0 = arith.constant 0 : i32
    return %arg2, %c0_i32 : i32, i32
  }
  func.func @transform_4(%arg0: i32, %arg1: i32, %arg2: i32) -> (i32, i32, i32) {
    %c0_i32 = arith.constant 0 : i32
    %c0_i32_0 = arith.constant 0 : i32
    return %arg0, %c0_i32, %arg1 : i32, i32, i32
  }
  func.func @transform_5(%arg0: i32, %arg1: i32, %arg2: i32) -> (i32, i32, i32) {
    %c0_i32 = arith.constant 0 : i32
    %c0_i32_0 = arith.constant 0 : i32
    return %arg0, %c0_i32, %arg1 : i32, i32, i32
  }
  func.func @transform_6(%arg0: i32, %arg1: i32, %arg2: i32) -> (i32, i32, i32, i32) {
    %c0_i32 = arith.constant 0 : i32
    %c0_i32_0 = arith.constant 0 : i32
    %c0_i32_1 = arith.constant 0 : i32
    return %arg0, %arg1, %c0_i32, %c0_i32_0 : i32, i32, i32, i32
  }
}

</mosaic_0001>

<bundles_post_ra>
// kernel: tpu_custom_call.1
= control target key start
LH: loop header
LB: loop body
LE: loop exit
PB: predicated region body
PF: predicated region fallthrough
CT: control target
= control target key end

     0   :  { %s4417_s0 = inlined_call_operand.vmem [shape: f32[2,32,320], index: 0, kind: input, shape index: {}]   ;;  %s4418_s1 = inlined_call_operand.vmem [shape: f32[192,32], index: 1, kind: input, shape index: {}]   ;;  %s4419_s2 = inlined_call_operand.vmem [shape: f32[32,192], index: 2, kind: input, shape index: {}]   ;;  %s4420_s3 = inlined_call_operand.vmem [shape: f32[192,1], index: 3, kind: input, shape index: {}]   ;;  %s4421_s4 = inlined_call_operand.hbm [shape: f32[2,32,320], index: 4, kind: output, shape index: {0}]   ;;  %s4422_s5 = inlined_call_operand.hbm [shape: s32[2,1,320], index: 5, kind: output, shape index: {1}]   ;;  %s4423_s6 = inlined_call_operand.vmem [shape: f32[2,1,1,1], index: 6, kind: output, shape index: {2}]  }
   0x1   :  { %4518 = sst [smem:[#allocation58_spill]] %s4417_s0 }
   0x2   :  { %4519 = sst [smem:[#allocation59_spill]] %s4418_s1 }
   0x3   :  { %4520 = sst [smem:[#allocation60_spill]] %s4419_s2 }
   0x4   :  { %4521 = sst [smem:[#allocation61_spill]] %s4420_s3 }
   0x5   :  { %4522 = sst [smem:[#allocation62_spill]] %s4421_s4 }
   0x6   :  { %12 = vsyncpa [#allocation5], 0 }
   0x7   :  { %14 = vsyncpa [#allocation5 + $0x1], 0 }
   0x8   :  { %15 = vsyncpa [#allocation7], 0 }
   0x9   :  { %17 = vsyncpa [#allocation7 + $0x1], 0  ;;  %s2779_s21 = smov 0   ;;  %s2781_s22 = smov 0  }
   0xa   :  { %s2783_s23 = smov 0   ;;  %s2785_s24 = smov 0  }
   0xb   :  { %s2787_s25 = smov 0   ;;  %s2789_s26 = smov 0  }
   0xc LB: > { %s2280_s27 = sadd.s32 4294967295, %s2737_s26   ;;  %s2281_s28 = sadd.s32 4294967294, %s2737_s26   ;;  %s2737_s26 = sphi %s2789_s26, %s23_s26   ;;  %s2733_s25 = sphi %s2787_s25, %s4701_s25   ;;  %s2729_s24 = sphi %s2785_s24, %s4700_s24   ;;  %s2725_s23 = sphi %s2783_s23, %s4699_s23   ;;  %s2721_s22 = sphi %s2781_s22, %s4698_s22   ;;  %s2717_s21 = sphi %s2779_s21, %s4697_s21  }
   0xd   : > { %s42_s29 = sadd.s32 1, %s2733_s25  ;;  %s157_s30 = sadd.s32 1, %s2725_s23 }
   0xe   : > { %p44_p0 = scmp.ge.s32.totalorder %s42_s29, 2  ;;  %p167_p1 = scmp.ne.s32.totalorder %s2725_s23, %s2721_s22 }
   0xf   : > { %p168_p2 = scmp.eq.s32.totalorder %s2280_s27, 1  ;;  %p173_p3 = scmp.ne.s32.totalorder %s2721_s22, %s2717_s21 }
  0x10   : > { %s4703_s29 = smov (%p44_p0, %s42_s29), 0  ;;  %p174_p5 = scmp.eq.s32.totalorder %s2281_s28, 1 }
  0x11   : > { %p2819_p4 = por %p168_p2, %p167_p1  ;;  %s152_s8 = ssub.s32 %s2733_s25, %s4703_s29 }
  0x12   : > { %p2287_p6 = scmp.ge.s32.totalorder %s2737_s26, 1  ;;  %p155_p7 = scmp.eq.s32.totalorder %s152_s8, 0 }
  0x13   : > { %p2826_p8 = por %p174_p5, %p173_p3  ;;  %p288_p9 = scmp.lt.s32.totalorder %s2737_s26, 3 }
  0x14   : > { %s2832_s10 = scalar_select %p155_p7, %s2725_s23, %s157_s30  }
  0x15   : > { %p289_p10 = pnand %p2287_p6, %p288_p9 }
  0x17   : > { %292 = sbr.rel (%p289_p10) target bundleno = 969 (0x3c9), region = 36 }
  0x1c   : > { %p349_p11 = scmp.lt.s32.totalorder %s2729_s24, 1  ;;  %v2739_v0 = vmov 0   ;;  %s4525_s3 = sld [smem:[#allocation61_spill]]  ;;  %vm452_vm0 = vcmask 261120   ;;  %vm4513_vm1 = vcmask 523264  }
  0x1d   : > { %2612 = vset.pattern.permute.xlu0 %v2739_v0  ;;  %2614 = vset.pattern.permute.xlu2 %v2739_v0  ;;  %s4526_s0 = sld [smem:[#allocation58_spill]]  ;;  %s4029_s20 = sand.u32 1, %s2721_s22  }
  0x1e   : > { %s2842_s15 = scalar_select %p349_p11, %s2729_s24, 1  ;;  %2613 = vset.pattern.permute.xlu1 %v2739_v0 }
  0x1f   : > { %s4527_s1 = sld [smem:[#allocation59_spill]]  ;;  %s2541_s11 = smul.u32 3, %s4029_s20 }
  0x20   : > { %s2542_s16 = smul.u32 96, %s2842_s15  ;;  %s4672_s2 = sld [smem:[#allocation60_spill]] }
  0x21   : > { %s4068_s12 = scalar_lea.vmem [#allocation6], %s2541_s11  ;;  %s2540_s8 = smul.u32 96, %s4029_s20 }
  0x22   : > { %v428_v1 = vld [vmem:[%s4525_s3] sm:$0xff]  ;;  %v429_v7 = vld [vmem:[%s4525_s3 + $0x8] sm:$0xff]  ;;  %v430_v16 = vld [vmem:[%s4525_s3 + $0x10] sm:$0xff]  ;;  %s2545_s13 = smul.u32 96, %s2729_s24  ;;  %s4696_s4 = sld [smem:[#allocation62_spill]] }
  0x23   : > { %v432_v2 = vld [vmem:[%s4525_s3 + $0x20] sm:$0xff]  ;;  %794 = vperm.xlu0 %2612, %v428_v1   ;;  %s2848_s19 = scalar_lea.vmem %s4526_s0, %s2542_s16  ;;  %v433_v10 = vld [vmem:[%s4525_s3 + $0x28] sm:$0xff]  ;;  %804 = vperm.xlu1 %2613, %v430_v16   ;;  %v431_v22 = vld [vmem:[%s4525_s3 + $0x18] sm:$0xff]  ;;  %s4273_s11 = scalar_lea.vmem [#allocation4], %s2540_s8 }
  0x24   : > { %814 = vperm.xlu2 %2614, %v432_v2   ;;  %v393_v3 = vld [vmem:[%s2848_s19 + $0x48] sm:$0xff]  ;;  %v395_v4 = vld [vmem:[%s2848_s19 + $0x58] sm:$0xff]  ;;  %v390_v5 = vld [vmem:[%s2848_s19 + $0x30] sm:$0xff]  ;;  %s2070_s14 = sshll.u32 %s4273_s11, 4  ;;  %s2045_s28 = scalar_lea.sflag [#allocation5], %s4029_s20  ;;  %s2071_s14 = int_to_ptr.vmem [resolvable:$true] %s2070_s14 }
  0x25   : > { %537 = vmatpush.msra.mxu0 %v393_v3  ;;  %2520 = vmatpush.msra.mxu1 %v393_v3  ;;  %v392_v6 = vld [vmem:[%s2848_s19 + $0x40] sm:$0xff]  ;;  %v387_v8 = vld [vmem:[%s2848_s19 + $0x18] sm:$0xff]  ;;  %v389_v9 = vld [vmem:[%s2848_s19 + $0x28] sm:$0xff] }
  0x26   : > { %715 = vmatpush.msra.mxu2 %v395_v4  ;;  %v384_v11 = vld [vmem:[%s2848_s19] sm:$0xff]  ;;  %v386_v12 = vld [vmem:[%s2848_s19 + $0x10] sm:$0xff]  ;;  %v2870_v14 = vld [vmem:[%s4527_s1 + $0xb8] sm:$0xff] }
  0x27   : > { %538 = vmatpush.msra.mxu0 %v390_v5  ;;  %2521 = vmatpush.msra.mxu1 %v390_v5  ;;  %v396_v13 = vld [vmem:[%s4527_s1] sm:$0xff]  ;;  %v394_v15 = vld [vmem:[%s2848_s19 + $0x50] sm:$0xff]  ;;  %v391_v17 = vld [vmem:[%s2848_s19 + $0x38] sm:$0xff] }
  0x28   : > { %716 = vmatpush.msra.mxu2 %v392_v6  ;;  %v388_v18 = vld [vmem:[%s2848_s19 + $0x20] sm:$0xff]  ;;  %v385_v20 = vld [vmem:[%s2848_s19 + $0x8] sm:$0xff]  ;;  %v439_v23 = vld [vmem:[%s4525_s3 + $0x58] sm:$0xff]  ;;  %s2069_s18 = scalar_lea.hbm %s4696_s4, %s2545_s13 }
  0x29   : > { %539 = vmatpush.msra.mxu0 %v387_v8  ;;  %2522 = vmatpush.msra.mxu1 %v387_v8  ;;  %v436_v19 = vld [vmem:[%s4525_s3 + $0x40] sm:$0xff]  ;;  %v397_v21 = vld [vmem:[%s4527_s1 + $0x8] sm:$0xff]  ;;  %v398_v24 = vld [vmem:[%s4527_s1 + $0x10] sm:$0xff]  ;;  %s2072_s27 = sshll.u32 %s2069_s18, 4  ;;  %s2073_s27 = int_to_ptr.hbm [resolvable:$true] %s2072_s27 }
  0x2a   : > { %717 = vmatpush.msra.mxu2 %v389_v9  ;;  %v442_v25 = vld [vmem:[%s4525_s3 + $0x70] sm:$0xff]  ;;  %v399_v26 = vld [vmem:[%s4527_s1 + $0x18] sm:$0xff]  ;;  %v445_v28 = vld [vmem:[%s4525_s3 + $0x88] sm:$0xff]  ;;  %s2641_s30 = sshra.s32 %s2073_s27, 4  ;;  %s2642_s30 = int_to_ptr.hbm [resolvable:$true] %s2641_s30 }
  0x2b   : > { %799 = vperm.xlu0 %2612, %v429_v7   ;;  %540 = vmatpush.msra.mxu0 %v384_v11  ;;  %v434_v27 = vld [vmem:[%s4525_s3 + $0x30] sm:$0xff]  ;;  %v400_v29 = vld [vmem:[%s4527_s1 + $0x20] sm:$0xff]  ;;  %v435_v30 = vld [vmem:[%s4525_s3 + $0x38] sm:$0xff]  ;;  %p2648_p1 = scmp.lt.s32.totalorder %s2642_s30, %s4696_s4 }
  0x2c   : > { %819 = vperm.xlu2 %2614, %v433_v10   ;;  %2523 = vmatpush.msra.mxu1 %v384_v11  ;;  %v448_v31 = vld [vmem:[%s4525_s3 + $0xa0] sm:$0xff]  ;;  %v401_v32 = vld [vmem:[%s4527_s1 + $0x28] sm:$0xff]  ;;  %v451_v33 = vld [vmem:[%s4525_s3 + $0xb8] sm:$0xff] }
  0x2d   : > { %718 = vmatpush.msra.mxu2 %v386_v12  ;;  %2289 = vmatmul.msk.f32.vlgmr.msra.gmra.mxu0 %vm452_vm0, %v396_v13  ;;  %v402_v34 = vld [vmem:[%s4527_s1 + $0x30] sm:$0xff]  ;;  %v437_v35 = vld [vmem:[%s4525_s3 + $0x48] sm:$0xff]  ;;  %v403_v36 = vld [vmem:[%s4527_s1 + $0x38] sm:$0xff] }
  0x2e   : > { %2312 = vmatmul.msk.f32.vlgmr.msra.gmra.mxu1 %vm452_vm0, %v2870_v14  ;;  %2337 = vmatmul.msk.f32.vlgmr.msra.gmra.mxu2 %vm452_vm0, %v396_v13  ;;  %v438_v37 = vld [vmem:[%s4525_s3 + $0x50] sm:$0xff]  ;;  %v404_v38 = vld [vmem:[%s4527_s1 + $0x40] sm:$0xff]  ;;  %v405_v39 = vld [vmem:[%s4527_s1 + $0x48] sm:$0xff] }
  0x2f   : > { %626 = vmatpush.msrb.mxu1 %v394_v15  ;;  %809 = vperm.xlu1 %2613, %v431_v22   ;;  %v440_v40 = vld [vmem:[%s4525_s3 + $0x60] sm:$0xff]  ;;  %v441_v41 = vld [vmem:[%s4525_s3 + $0x68] sm:$0xff]  ;;  %v406_v42 = vld [vmem:[%s4527_s1 + $0x50] sm:$0xff] }
  0x30   : > { %v443_v43 = vld [vmem:[%s4525_s3 + $0x78] sm:$0xff]  ;;  %v444_v44 = vld [vmem:[%s4525_s3 + $0x80] sm:$0xff]  ;;  %v446_v46 = vld [vmem:[%s4525_s3 + $0x90] sm:$0xff] }
  0x31   : > { %627 = vmatpush.msrb.mxu1 %v391_v17  ;;  %v407_v45 = vld [vmem:[%s4527_s1 + $0x58] sm:$0xff]  ;;  %v408_v48 = vld [vmem:[%s4527_s1 + $0x60] sm:$0xff]  ;;  %v449_v49 = vld [vmem:[%s4525_s3 + $0xa8] sm:$0xff] }
  0x32   : > { %v447_v47 = vld [vmem:[%s4525_s3 + $0x98] sm:$0xff]  ;;  %v450_v50 = vld [vmem:[%s4525_s3 + $0xb0] sm:$0xff]  ;;  %v409_v51 = vld [vmem:[%s4527_s1 + $0x68] sm:$0xff] }
  0x33   : > { %628 = vmatpush.msrb.mxu1 %v388_v18  ;;  %824 = vperm.xlu0 %2612, %v434_v27   ;;  %v410_v52 = vld [vmem:[%s4527_s1 + $0x70] sm:$0xff]  ;;  %v411_v53 = vld [vmem:[%s4527_s1 + $0x78] sm:$0xff]  ;;  %v412_v55 = vld [vmem:[%s4527_s1 + $0x80] sm:$0xff] }
  0x34   : > { %834 = vperm.xlu2 %2614, %v436_v19   ;;  %v413_v61 = vld [vmem:[%s4527_s1 + $0x88] sm:$0xff]  ;;  %v414_v5 = vld [vmem:[%s4527_s1 + $0x90] sm:$0xff] }
  0x35   : > { %629 = vmatpush.msrb.mxu1 %v385_v20  ;;  %2290 = vmatmul.msk.f32.gmra.mxu0 %vm452_vm0, %v397_v21 }
  0x36   : > { %2313 = vmatmul.msk.f32.vlgmr.msrb.gmra.mxu1 %vm452_vm0, %v396_v13  ;;  %2338 = vmatmul.msk.f32.gmra.mxu2 %vm452_vm0, %v397_v21  ;;  %v415_v13 = vld [vmem:[%s4527_s1 + $0x98] sm:$0xff] }
  0x37   : > { %829 = vperm.xlu1 %2613, %v435_v30   ;;  %v416_v30 = vld [vmem:[%s4527_s1 + $0xa0] sm:$0xff] }
  0x3b   : > { %839 = vperm.xlu0 %2612, %v437_v35  }
  0x3c   : > { %849 = vperm.xlu2 %2614, %v439_v23  }
  0x3d   : > { %2291 = vmatmul.msk.f32.gmra.mxu0 %vm452_vm0, %v398_v24 }
  0x3e   : > { %2314 = vmatmul.msk.f32.gmra.mxu1 %vm452_vm0, %v397_v21  ;;  %2339 = vmatmul.msk.f32.gmra.mxu2 %vm452_vm0, %v398_v24 }
  0x3f   : > { %844 = vperm.xlu1 %2613, %v438_v37  }
  0x43   : > { %854 = vperm.xlu0 %2612, %v440_v40  }
  0x44   : > { %864 = vperm.xlu2 %2614, %v442_v25  }
  0x45   : > { %2292 = vmatmul.msk.f32.gmra.mxu0 %vm452_vm0, %v399_v26 }
  0x46   : > { %2315 = vmatmul.msk.f32.gmra.mxu1 %vm452_vm0, %v398_v24  ;;  %2340 = vmatmul.msk.f32.gmra.mxu2 %vm452_vm0, %v399_v26 }
  0x47   : > { %859 = vperm.xlu1 %2613, %v441_v41  }
  0x4b   : > { %869 = vperm.xlu0 %2612, %v443_v43   ;;  %v417_v43 = vld [vmem:[%s4527_s1 + $0xa8] sm:$0xff] }
  0x4c   : > { %879 = vperm.xlu2 %2614, %v445_v28  }
  0x4d   : > { %2293 = vmatmul.msk.f32.gmra.mxu0 %vm452_vm0, %v400_v29 }
  0x4e   : > { %2316 = vmatmul.msk.f32.gmra.mxu1 %vm452_vm0, %v399_v26  ;;  %2341 = vmatmul.msk.f32.gmra.mxu2 %vm452_vm0, %v400_v29 }
  0x4f   : > { %874 = vperm.xlu1 %2613, %v444_v44  }
  0x53   : > { %884 = vperm.xlu0 %2612, %v446_v46  }
  0x54   : > { %894 = vperm.xlu2 %2614, %v448_v31  }
  0x55   : > { %2294 = vmatmul.msk.f32.gmra.mxu0 %vm452_vm0, %v401_v32 }
  0x56   : > { %2317 = vmatmul.msk.f32.gmra.mxu1 %vm452_vm0, %v400_v29  ;;  %2342 = vmatmul.msk.f32.gmra.mxu2 %vm452_vm0, %v401_v32 }
  0x57   : > { %889 = vperm.xlu1 %2613, %v447_v47  }
  0x5b   : > { %899 = vperm.xlu0 %2612, %v449_v49  }
  0x5c   : > { %909 = vperm.xlu2 %2614, %v451_v33  }
  0x5d   : > { %2295 = vmatmul.msk.f32.gmra.mxu0 %vm452_vm0, %v402_v34 }
  0x5e   : > { %2318 = vmatmul.msk.f32.gmra.mxu1 %vm452_vm0, %v401_v32  ;;  %2343 = vmatmul.msk.f32.gmra.mxu2 %vm452_vm0, %v402_v34 }
  0x5f   : > { %904 = vperm.xlu1 %2613, %v450_v50  }
  0x65   : > { %2296 = vmatmul.msk.f32.gmra.mxu0 %vm452_vm0, %v403_v36 }
  0x66   : > { %2319 = vmatmul.msk.f32.gmra.mxu1 %vm452_vm0, %v402_v34  ;;  %2344 = vmatmul.msk.f32.gmra.mxu2 %vm452_vm0, %v403_v36 }
  0x6d   : > { %2297 = vmatmul.msk.f32.gmra.mxu0 %vm452_vm0, %v404_v38 }
  0x6e   : > { %2320 = vmatmul.msk.f32.gmra.mxu1 %vm452_vm0, %v403_v36  ;;  %2345 = vmatmul.msk.f32.gmra.mxu2 %vm452_vm0, %v404_v38 }
  0x75   : > { %2298 = vmatmul.msk.f32.gmra.mxu0 %vm452_vm0, %v405_v39 }
  0x76   : > { %2321 = vmatmul.msk.f32.gmra.mxu1 %vm452_vm0, %v404_v38  ;;  %2346 = vmatmul.msk.f32.gmra.mxu2 %vm452_vm0, %v405_v39 }
  0x7d   : > { %2299 = vmatmul.msk.f32.gmra.mxu0 %vm452_vm0, %v406_v42 }
  0x7e   : > { %2322 = vmatmul.msk.f32.gmra.mxu1 %vm452_vm0, %v405_v39  ;;  %2347 = vmatmul.msk.f32.gmra.mxu2 %vm452_vm0, %v406_v42  ;;  %v815_v24 = vpop.permute.xlu2 %814 }
  0x85   : > { %2300 = vmatmul.msk.f32.gmra.mxu0 %vm452_vm0, %v407_v45 }
  0x86   : > { %2323 = vmatmul.msk.f32.gmra.mxu1 %vm452_vm0, %v406_v42  ;;  %2348 = vmatmul.msk.f32.gmra.mxu2 %vm452_vm0, %v407_v45  ;;  %v820_v40 = vpop.permute.xlu2 %819 }
  0x8d   : > { %2301 = vmatmul.msk.f32.gmra.mxu0 %vm452_vm0, %v408_v48 }
  0x8e   : > { %2324 = vmatmul.msk.f32.gmra.mxu1 %vm452_vm0, %v407_v45  ;;  %2349 = vmatmul.msk.f32.gmra.mxu2 %vm452_vm0, %v408_v48 }
  0x95   : > { %2302 = vmatmul.msk.f32.gmra.mxu0 %vm452_vm0, %v409_v51  ;;  %v795_v57 = vpop.permute.xlu0 %794  ;;  %v805_v0 = vpop.permute.xlu1 %804 }
  0x96   : > { %2325 = vmatmul.msk.f32.gmra.mxu1 %vm452_vm0, %v408_v48  ;;  %2350 = vmatmul.msk.f32.gmra.mxu2 %vm452_vm0, %v409_v51 }
  0x9d   : > { %2303 = vmatmul.msk.f32.gmra.mxu0 %vm452_vm0, %v410_v52  ;;  %v800_v1 = vpop.permute.xlu0 %799 }
  0x9e   : > { %2326 = vmatmul.msk.f32.gmra.mxu1 %vm452_vm0, %v409_v51  ;;  %2351 = vmatmul.msk.f32.gmra.mxu2 %vm452_vm0, %v410_v52 }
  0xa1   : > { %v810_v8 = vpop.permute.xlu1 %809 }
  0xa5   : > { %2304 = vmatmul.msk.f32.gmra.mxu0 %vm452_vm0, %v411_v53  ;;  %v825_v51 = vpop.permute.xlu0 %824 }
  0xa6   : > { %2327 = vmatmul.msk.f32.gmra.mxu1 %vm452_vm0, %v410_v52  ;;  %2352 = vmatmul.msk.f32.gmra.mxu2 %vm452_vm0, %v411_v53 }
  0xaa   : > { %v542_v54 = vpop.f32.mrf.mxu0 }
  0xab   : > { %v3033_v56 = vpop.f32.mrf.mxu1  ;;  %v3082_v25 = vsub.f32 %v795_v57, %v542_v54 }
  0xad   : > { %2305 = vmatmul.msk.f32.gmra.mxu0 %vm452_vm0, %v412_v55 }
  0xae   : > { %2328 = vmatmul.msk.f32.gmra.mxu1 %vm452_vm0, %v411_v53  ;;  %2353 = vmatmul.msk.f32.gmra.mxu2 %vm452_vm0, %v412_v55 }
  0xb1   : > { %v720_v58 = vpop.f32.mrf.mxu2 }
  0xb2   : > { %v3038_v59 = vsub.f32 %v795_v57, %v720_v58  ;;  %v545_v60 = vpop.f32.mrf.mxu0 }
  0xb3   : > { %v631_v62 = vpop.f32.mrf.mxu1  ;;  %v3065_v15 = vsub.f32 %v800_v1, %v545_v60 }
  0xb4   : > { %4528 = vst [vmem:[#allocation10_spill] sm:$0xff] %v3038_v59  ;;  %v3043_v63 = vsub.f32 %v795_v57, %v631_v62  ;;  %v1068_v10 = vsel %vm4513_vm1, %v3038_v59, inf }
  0xb5   : > { %2306 = vmatmul.msk.f32.gmra.mxu0 %vm452_vm0, %v413_v61 }
  0xb6   : > { %4529 = vst [vmem:[#allocation11_spill] sm:$0xff] %v3043_v63  ;;  %2329 = vmatmul.msk.f32.gmra.mxu1 %vm452_vm0, %v412_v55  ;;  %2354 = vmatmul.msk.f32.gmra.mxu2 %vm452_vm0, %v413_v61  ;;  %v418_v55 = vld [vmem:[%s4527_s1 + $0xb0] sm:$0xff]  ;;  %s2647_s1 = scalar_lea.hbm %s4696_s4, 192 }
  0xb9   : > { %v723_v2 = vpop.f32.mrf.mxu2 }
  0xba   : > { %v3048_v3 = vsub.f32 %v800_v1, %v723_v2  ;;  %v548_v4 = vpop.f32.mrf.mxu0  ;;  %v830_v2 = vpop.permute.xlu1 %829 }
  0xbb   : > { %v634_v6 = vpop.f32.mrf.mxu1  ;;  %v3080_v23 = vsub.f32 %v805_v0, %v548_v4 }
  0xbc   : > { %4530 = vst [vmem:[#allocation12_spill] sm:$0xff] %v3048_v3  ;;  %v3053_v7 = vsub.f32 %v800_v1, %v634_v6  ;;  %v1069_v27 = vsel %vm4513_vm1, %v3048_v3, inf }
  0xbd   : > { %2307 = vmatmul.msk.f32.gmra.mxu0 %vm452_vm0, %v414_v5  ;;  %v1009_v31 = vmin.f32 %v3082_v25, %v3080_v23 }
  0xbe   : > { %4531 = vst [vmem:[#allocation13_spill] sm:$0xff] %v3053_v7  ;;  %2330 = vmatmul.msk.f32.gmra.mxu1 %vm452_vm0, %v413_v61  ;;  %2355 = vmatmul.msk.f32.gmra.mxu2 %vm452_vm0, %v414_v5 }
  0xc1   : > { %v726_v9 = vpop.f32.mrf.mxu2 }
  0xc2   : > { %v3060_v11 = vsub.f32 %v805_v0, %v726_v9  ;;  %v551_v12 = vpop.f32.mrf.mxu0 }
  0xc3   : > { %v3067_v16 = vsub.f32 %v810_v8, %v551_v12  ;;  %v637_v17 = vpop.f32.mrf.mxu1 }
  0xc4   : > { %4532 = vst [vmem:[#allocation14_spill] sm:$0xff] %v3060_v11  ;;  %v1070_v18 = vsel %vm4513_vm1, %v3060_v11, inf  ;;  %v3071_v19 = vsub.f32 %v805_v0, %v637_v17 }
  0xc5   : > { %v1071_v20 = vmin.f32 %v1068_v10, %v1070_v18  ;;  %v1010_v21 = vmin.f32 %v3065_v15, %v3067_v16  ;;  %2308 = vmatmul.msk.f32.gmra.mxu0 %vm452_vm0, %v415_v13 }
  0xc6   : > { %4533 = vst [vmem:[#allocation15_spill] sm:$0xff] %v3071_v19  ;;  %v1038_v22 = vmin.f32 %v3043_v63, %v3071_v19  ;;  %2331 = vmatmul.msk.f32.gmra.mxu1 %vm452_vm0, %v414_v5  ;;  %2356 = vmatmul.msk.f32.gmra.mxu2 %vm452_vm0, %v415_v13 }
  0xc9   : > { %v729_v26 = vpop.f32.mrf.mxu2 }
  0xca   : > { %v3086_v28 = vsub.f32 %v810_v8, %v729_v26  ;;  %v554_v29 = vpop.f32.mrf.mxu0 }
  0xcb   : > { %v3093_v32 = vsub.f32 %v815_v24, %v554_v29  ;;  %v640_v33 = vpop.f32.mrf.mxu1 }
  0xcc   : > { %4534 = vst [vmem:[#allocation16_spill] sm:$0xff] %v3086_v28  ;;  %v1072_v34 = vsel %vm4513_vm1, %v3086_v28, inf  ;;  %v3097_v35 = vsub.f32 %v810_v8, %v640_v33 }
  0xcd   : > { %v1073_v36 = vmin.f32 %v1069_v27, %v1072_v34  ;;  %v1011_v37 = vmin.f32 %v1009_v31, %v3093_v32  ;;  %2309 = vmatmul.msk.f32.gmra.mxu0 %vm452_vm0, %v416_v30 }
  0xce   : > { %4535 = vst [vmem:[#allocation17_spill] sm:$0xff] %v3097_v35  ;;  %v1039_v38 = vmin.f32 %v3053_v7, %v3097_v35  ;;  %2332 = vmatmul.msk.f32.gmra.mxu1 %vm452_vm0, %v415_v13  ;;  %2357 = vmatmul.msk.f32.gmra.mxu2 %vm452_vm0, %v416_v30 }
  0xd1   : > { %v732_v39 = vpop.f32.mrf.mxu2 }
  0xd2   : > { %v3105_v41 = vsub.f32 %v815_v24, %v732_v39  ;;  %v557_v42 = vpop.f32.mrf.mxu0 }
  0xd3   : > { %v3110_v44 = vsub.f32 %v820_v40, %v557_v42  ;;  %v643_v45 = vpop.f32.mrf.mxu1 }
  0xd4   : > { %4536 = vst [vmem:[#allocation18_spill] sm:$0xff] %v3105_v41  ;;  %v1074_v46 = vsel %vm4513_vm1, %v3105_v41, inf  ;;  %v3114_v47 = vsub.f32 %v815_v24, %v643_v45 }
  0xd5   : > { %v1075_v48 = vmin.f32 %v1071_v20, %v1074_v46  ;;  %v1012_v49 = vmin.f32 %v1010_v21, %v3110_v44  ;;  %2310 = vmatmul.msk.f32.gmra.mxu0 %vm452_vm0, %v417_v43  ;;  %v835_v21 = vpop.permute.xlu2 %834 }
  0xd6   : > { %4537 = vst [vmem:[#allocation19_spill] sm:$0xff] %v3114_v47  ;;  %v1040_v50 = vmin.f32 %v1038_v22, %v3114_v47  ;;  %2333 = vmatmul.msk.f32.gmra.mxu1 %vm452_vm0, %v416_v30  ;;  %2358 = vmatmul.msk.f32.gmra.mxu2 %vm452_vm0, %v417_v43 }
  0xd9   : > { %v735_v52 = vpop.f32.mrf.mxu2 }
  0xda   : > { %v3121_v53 = vsub.f32 %v820_v40, %v735_v52  ;;  %v560_v54 = vpop.f32.mrf.mxu0 }
  0xdb   : > { %v3126_v57 = vsub.f32 %v825_v51, %v560_v54  ;;  %v646_v58 = vpop.f32.mrf.mxu1 }
  0xdc   : > { %4538 = vst [vmem:[#allocation20_spill] sm:$0xff] %v3121_v53  ;;  %v1076_v60 = vsel %vm4513_vm1, %v3121_v53, inf  ;;  %v3130_v61 = vsub.f32 %v820_v40, %v646_v58 }
  0xdd   : > { %v1077_v62 = vmin.f32 %v1073_v36, %v1076_v60  ;;  %v1013_v0 = vmin.f32 %v1011_v37, %v3126_v57  ;;  %2311 = vmatmul.msk.f32.gmra.mxu0 %vm452_vm0, %v418_v55  ;;  %v840_v36 = vpop.permute.xlu0 %839 }
  0xde   : > { %4539 = vst [vmem:[#allocation21_spill] sm:$0xff] %v3130_v61  ;;  %v1041_v1 = vmin.f32 %v1039_v38, %v3130_v61  ;;  %2334 = vmatmul.msk.f32.gmra.mxu1 %vm452_vm0, %v417_v43  ;;  %2359 = vmatmul.msk.f32.gmra.mxu2 %vm452_vm0, %v418_v55 }
  0xe1   : > { %v738_v4 = vpop.f32.mrf.mxu2 }
  0xe2   : > { %v3137_v5 = vsub.f32 %v825_v51, %v738_v4  ;;  %v563_v6 = vpop.f32.mrf.mxu0  ;;  %v850_v4 = vpop.permute.xlu2 %849 }
  0xe3   : > { %v3139_v8 = vsub.f32 %v830_v2, %v563_v6  ;;  %v649_v9 = vpop.f32.mrf.mxu1 }
  0xe4   : > { %4540 = vst [vmem:[#allocation22_spill] sm:$0xff] %v3137_v5  ;;  %v1078_v10 = vsel %vm4513_vm1, %v3137_v5, inf  ;;  %v3143_v12 = vsub.f32 %v825_v51, %v649_v9 }
  0xe5   : > { %v1079_v13 = vmin.f32 %v1075_v48, %v1078_v10  ;;  %v1014_v17 = vmin.f32 %v1012_v49, %v3139_v8 }
  0xe6   : > { %4541 = vst [vmem:[#allocation23_spill] sm:$0xff] %v3143_v12  ;;  %v1042_v18 = vmin.f32 %v1040_v50, %v3143_v12  ;;  %2335 = vmatmul.msk.f32.gmra.mxu1 %vm452_vm0, %v418_v55  ;;  %2360 = vmatmul.msk.f32.gmra.mxu2 %vm452_vm0, %v2870_v14 }
  0xe9   : > { %v741_v20 = vpop.f32.mrf.mxu2 }
  0xea   : > { %v3150_v22 = vsub.f32 %v830_v2, %v741_v20  ;;  %v566_v24 = vpop.f32.mrf.mxu0 }
  0xeb   : > { %v3152_v26 = vsub.f32 %v835_v21, %v566_v24  ;;  %v652_v27 = vpop.f32.mrf.mxu1 }
  0xec   : > { %4542 = vst [vmem:[#allocation24_spill] sm:$0xff] %v3150_v22  ;;  %v1080_v29 = vsel %vm4513_vm1, %v3150_v22, inf  ;;  %v3156_v30 = vsub.f32 %v830_v2, %v652_v27 }
  0xed   : > { %v1081_v31 = vmin.f32 %v1077_v62, %v1080_v29  ;;  %v1015_v33 = vmin.f32 %v1013_v0, %v3152_v26  ;;  %v855_v29 = vpop.permute.xlu0 %854 }
  0xee   : > { %4543 = vst [vmem:[#allocation25_spill] sm:$0xff] %v3156_v30  ;;  %v1043_v34 = vmin.f32 %v1041_v1, %v3156_v30  ;;  %2336 = vmatmul.msk.f32.gmra.mxu1 %vm452_vm0, %v2870_v14  ;;  %v845_v14 = vpop.permute.xlu1 %844 }
  0xf1   : > { %v744_v37 = vpop.f32.mrf.mxu2 }
  0xf2   : > { %v3162_v38 = vsub.f32 %v835_v21, %v744_v37  ;;  %v569_v39 = vpop.f32.mrf.mxu0 }
  0xf3   : > { %v3164_v40 = vsub.f32 %v840_v36, %v569_v39  ;;  %v655_v42 = vpop.f32.mrf.mxu1 }
  0xf4   : > { %4544 = vst [vmem:[#allocation26_spill] sm:$0xff] %v3162_v38  ;;  %v1082_v43 = vsel %vm4513_vm1, %v3162_v38, inf  ;;  %v3168_v45 = vsub.f32 %v835_v21, %v655_v42 }
  0xf5   : > { %v1083_v46 = vmin.f32 %v1079_v13, %v1082_v43  ;;  %v3171_v48 = vmin.f32 %v1014_v17, %v3164_v40 }
  0xf6   : > { %4545 = vst [vmem:[#allocation27_spill] sm:$0xff] %v3168_v45  ;;  %v1044_v49 = vmin.f32 %v1042_v18, %v3168_v45  ;;  %v870_v45 = vpop.permute.xlu0 %869 }
  0xf9   : > { %v747_v50 = vpop.f32.mrf.mxu2 }
  0xfa   : > { %v3174_v51 = vsub.f32 %v840_v36, %v747_v50  ;;  %v572_v52 = vpop.f32.mrf.mxu0 }
  0xfb   : > { %v3176_v54 = vsub.f32 %v845_v14, %v572_v52  ;;  %v658_v55 = vpop.f32.mrf.mxu1 }
  0xfc   : > { %4546 = vst [vmem:[#allocation28_spill] sm:$0xff] %v3174_v51  ;;  %v1084_v58 = vsel %vm4513_vm1, %v3174_v51, inf  ;;  %v3180_v60 = vsub.f32 %v840_v36, %v658_v55 }
  0xfd   : > { %v1085_v62 = vmin.f32 %v1081_v31, %v1084_v58  ;;  %v1017_v0 = vmin.f32 %v1015_v33, %v3176_v54 }
  0xfe   : > { %4547 = vst [vmem:[#allocation29_spill] sm:$0xff] %v3180_v60  ;;  %v1045_v1 = vmin.f32 %v1043_v34, %v3180_v60  ;;  %v3245_v47 = vpop.permute.xlu0 %884 }
 0x101   : > { %v750_v2 = vpop.f32.mrf.mxu2 }
 0x102   : > { %v3184_v6 = vsub.f32 %v845_v14, %v750_v2  ;;  %v575_v9 = vpop.f32.mrf.mxu0 }
 0x103   : > { %v3186_v10 = vsub.f32 %v850_v4, %v575_v9  ;;  %v661_v13 = vpop.f32.mrf.mxu1 }
 0x104   : > { %4548 = vst [vmem:[#allocation30_spill] sm:$0xff] %v3184_v6  ;;  %v1086_v17 = vsel %vm4513_vm1, %v3184_v6, inf  ;;  %v3190_v18 = vsub.f32 %v845_v14, %v661_v13 }
 0x105   : > { %v1087_v20 = vmin.f32 %v1083_v46, %v1086_v17  ;;  %v1018_v21 = vmin.f32 %v3171_v48, %v3186_v10 }
 0x106   : > { %4549 = vst [vmem:[#allocation31_spill] sm:$0xff] %v3190_v18  ;;  %v1046_v24 = vmin.f32 %v1044_v49, %v3190_v18  ;;  %v3269_v38 = vpop.permute.xlu0 %899 }
 0x109   : > { %v753_v27 = vpop.f32.mrf.mxu2 }
 0x10a   : > { %v3195_v31 = vsub.f32 %v850_v4, %v753_v27  ;;  %v578_v33 = vpop.f32.mrf.mxu0 }
 0x10b   : > { %v3197_v34 = vsub.f32 %v855_v29, %v578_v33  ;;  %v664_v36 = vpop.f32.mrf.mxu1 }
 0x10c   : > { %4550 = vst [vmem:[#allocation32_spill] sm:$0xff] %v3195_v31  ;;  %v1088_v37 = vsel %vm4513_vm1, %v3195_v31, inf  ;;  %v3201_v39 = vsub.f32 %v850_v4, %v664_v36 }
 0x10d   : > { %v1089_v42 = vmin.f32 %v1085_v62, %v1088_v37  ;;  %v3204_v43 = vmin.f32 %v1017_v0, %v3197_v34  ;;  %v860_v62 = vpop.permute.xlu1 %859 }
 0x10e   : > { %4551 = vst [vmem:[#allocation33_spill] sm:$0xff] %v3201_v39  ;;  %v1047_v46 = vmin.f32 %v1045_v1, %v3201_v39 }
 0x111   : > { %v756_v48 = vpop.f32.mrf.mxu2 }
 0x112   : > { %v3207_v49 = vsub.f32 %v855_v29, %v756_v48  ;;  %v581_v14 = vpop.f32.mrf.mxu0 }
 0x113   : > { %v667_v50 = vpop.f32.mrf.mxu1 }
 0x114   : > { %4552 = vst [vmem:[#allocation34_spill] sm:$0xff] %v3207_v49  ;;  %v1090_v52 = vsel %vm4513_vm1, %v3207_v49, inf  ;;  %v3211_v55 = vsub.f32 %v855_v29, %v667_v50 }
 0x115   : > { %v3213_v58 = vmin.f32 %v1087_v20, %v1090_v52  ;;  %v865_v20 = vpop.permute.xlu2 %864  ;;  %v875_v61 = vpop.permute.xlu1 %874 }
 0x116   : > { %4553 = vst [vmem:[#allocation35_spill] sm:$0xff] %v3211_v55  ;;  %v3216_v2 = vmin.f32 %v1046_v24, %v3211_v55 }
 0x119   : > { %v759_v0 = vpop.f32.mrf.mxu2 }
 0x11a   : > { %v3218_v4 = vsub.f32 %v860_v62, %v759_v0  ;;  %v584_v1 = vpop.f32.mrf.mxu0 }
 0x11b   : > { %v670_v9 = vpop.f32.mrf.mxu1 }
 0x11c   : > { %4554 = vst [vmem:[#allocation36_spill] sm:$0xff] %v3218_v4  ;;  %v1092_v13 = vsel %vm4513_vm1, %v3218_v4, inf  ;;  %v3222_v17 = vsub.f32 %v860_v62, %v670_v9 }
 0x11d   : > { %v3224_v27 = vmin.f32 %v1089_v42, %v1092_v13  ;;  %v880_v60 = vpop.permute.xlu2 %879  ;;  %v3247_v42 = vsub.f32 %v860_v62, %v581_v14  ;;  %v3258_v49 = vpop.permute.xlu1 %889  ;;  %v3266_v62 = vsub.f32 %v865_v20, %v584_v1 }
 0x11e   : > { %4555 = vst [vmem:[#allocation37_spill] sm:$0xff] %v3222_v17  ;;  %v3227_v29 = vmin.f32 %v1047_v46, %v3222_v17 }
 0x11f   : > { %v1020_v63 = vmin.f32 %v1018_v21, %v3247_v42  ;;  %v1021_v1 = vmin.f32 %v3204_v43, %v3266_v62 }
 0x121   : > { %v762_v33 = vpop.f32.mrf.mxu2 }
 0x122   : > { %v3229_v24 = vsub.f32 %v865_v20, %v762_v33  ;;  %v587_v36 = vpop.f32.mrf.mxu0 }
 0x123   : > { %v673_v37 = vpop.f32.mrf.mxu1  ;;  %v3251_v7 = vsub.f32 %v870_v45, %v587_v36 }
 0x124   : > { %4556 = vst [vmem:[#allocation38_spill] sm:$0xff] %v3229_v24  ;;  %v3233_v48 = vsel %vm4513_vm1, %v3229_v24, inf  ;;  %v3235_v50 = vsub.f32 %v865_v20, %v673_v37 }
 0x125   : > { %v3243_v52 = vpop.permute.xlu2 %894  ;;  %v1022_v31 = vmin.f32 %v1020_v63, %v3251_v7  ;;  %v3293_v41 = vpop.permute.xlu1 %904 }
 0x126   : > { %4557 = vst [vmem:[#allocation39_spill] sm:$0xff] %v3235_v50 }
 0x129   : > { %v765_v46 = vpop.f32.mrf.mxu2 }
 0x12a   : > { %v590_v0 = vpop.f32.mrf.mxu0 }
 0x12b   : > { %v676_v9 = vpop.f32.mrf.mxu1 }
 0x12c   : > { %v3306_v3 = vsub.f32 %v870_v45, %v676_v9 }
 0x12d   : > { %v3264_v14 = vpop.permute.xlu2 %909 }
 0x12e   : > { %v3279_v63 = vsub.f32 %v3264_v14, %v3033_v56  ;;  %4562 = vst [vmem:[#allocation44_spill] sm:$0xff] %v3306_v3 }
 0x130   : > { %4558 = vst [vmem:[#allocation40_spill] sm:$0xff] %v3279_v63 }
 0x131   : > { %v768_v13 = vpop.f32.mrf.mxu2 }
 0x132   : > { %v593_v33 = vpop.f32.mrf.mxu0 }
 0x133   : > { %v679_v17 = vpop.f32.mrf.mxu1  ;;  %v3254_v24 = vsub.f32 %v880_v60, %v593_v33  ;;  %v3271_v33 = vsub.f32 %v875_v61, %v590_v0 }
 0x135   : > { %v1024_v36 = vmin.f32 %v1022_v31, %v3254_v24  ;;  %v1023_v0 = vmin.f32 %v1021_v1, %v3271_v33  ;;  %v3301_v1 = vsub.f32 %v875_v61, %v768_v13 }
 0x137   : > { %4560 = vst [vmem:[#allocation42_spill] sm:$0xff] %v3301_v1 }
 0x139   : > { %v771_v55 = vpop.f32.mrf.mxu2 }
 0x13a   : > { %v596_v39 = vpop.f32.mrf.mxu0 }
 0x13b   : > { %v682_v18 = vpop.f32.mrf.mxu1  ;;  %v3284_v31 = vsub.f32 %v3245_v47, %v596_v39 }
 0x13d   : > { %v1025_v53 = vmin.f32 %v1023_v0, %v3284_v31 }
 0x141   : > { %v774_v30 = vpop.f32.mrf.mxu2 }
 0x142   : > { %v599_v37 = vpop.f32.mrf.mxu0 }
 0x143   : > { %v3241_v12 = vpop.f32.mrf.mxu1  ;;  %v3262_v6 = vsub.f32 %v3258_v49, %v599_v37 }
 0x145   : > { %v1026_v22 = vmin.f32 %v1024_v36, %v3262_v6 }
 0x149   : > { %v3249_v35 = vpop.f32.mrf.mxu2 }
 0x14a   : > { %v602_v19 = vpop.f32.mrf.mxu0 }
 0x14b   : > { %v3256_v4 = vpop.f32.mrf.mxu1  ;;  %v3289_v37 = vsub.f32 %v3243_v52, %v602_v19  ;;  %v4484_v19 = vlaneseq }
 0x14d   : > { %v1027_v43 = vmin.f32 %v1025_v53, %v3289_v37  ;;  %v3314_v53 = vsub.f32 %v880_v60, %v682_v18 }
 0x14f   : > { %4564 = vst [vmem:[#allocation46_spill] sm:$0xff] %v3314_v53 }
 0x151   : > { %v780_v51 = vpop.f32.mrf.mxu2 }
 0x152   : > { %v605_v21 = vpop.f32.mrf.mxu0 }
 0x153   : > { %v3275_v5 = vsub.f32 %v3269_v38, %v605_v21  ;;  %v691_v21 = vpop.f32.mrf.mxu1 }
 0x155   : > { %v1028_v20 = vmin.f32 %v1026_v22, %v3275_v5  ;;  %v3299_v22 = vsub.f32 %v870_v45, %v765_v46  ;;  %v3317_v46 = vshrl.u32 %v4484_v19, 7 }
 0x157   : > { %v1030_v36 = vmin.f32 %v1028_v20, %v3279_v63  ;;  %4559 = vst [vmem:[#allocation41_spill] sm:$0xff] %v3299_v22  ;;  %v3304_v20 = vsub.f32 %v880_v60, %v771_v55  ;;  %v1096_v59 = vsel %vm4513_vm1, %v3299_v22, inf  ;;  %v3310_v63 = vsub.f32 %v875_v61, %v679_v17 }
 0x158   : > { %v1051_v61 = vmin.f32 %v3227_v29, %v3306_v3  ;;  %v3325_v17 = vsub.f32 %v3245_v47, %v774_v30  ;;  %v4566_v60 = vmin.f32 %v3213_v58, %v3233_v48  ;;  %v3339_v30 = vadd.s32 16, %v3317_v46 }
 0x159   : > { %v783_v56 = vpop.f32.mrf.mxu2  ;;  %4561 = vst [vmem:[#allocation43_spill] sm:$0xff] %v3304_v20  ;;  %v1100_v45 = vsel %vm4513_vm1, %v3304_v20, inf  ;;  %v3342_v29 = vadd.s32 24, %v3317_v46  ;;  %v3345_v58 = vadd.s32 32, %v3317_v46  ;;  %v3348_v48 = vadd.s32 40, %v3317_v46 }
 0x15a   : > { %v608_v28 = vpop.f32.mrf.mxu0  ;;  %4563 = vst [vmem:[#allocation45_spill] sm:$0xff] %v3310_v63  ;;  %v1053_v20 = vmin.f32 %v1051_v61, %v3314_v53  ;;  %v3367_v61 = vadd.s32 64, %v3317_v46  ;;  %v3388_v53 = vadd.s32 104, %v3317_v46  ;;  %v3393_v3 = vsub.f32 %v3258_v49, %v3256_v4 }
 0x15b   : > { %v3297_v39 = vsub.f32 %v3293_v41, %v608_v28  ;;  %v1098_v28 = vsel %vm4513_vm1, %v3301_v1, inf  ;;  %4565 = vst [vmem:[#allocation47_spill] sm:$0xff] %v3325_v17  ;;  %v3404_v22 = vsub.f32 %v3243_v52, %v691_v21 }
 0x15c   : > { %v1099_v18 = vmin.f32 %v4566_v60, %v1098_v28  ;;  %v3357_v28 = vadd.s32 48, %v3317_v46  ;;  %v3370_v60 = vadd.s32 72, %v3317_v46 }
 0x15d   : > { %v1029_v11 = vmin.f32 %v1027_v43, %v3297_v39  ;;  %v694_v43 = vpop.f32.mrf.mxu1 }
 0x15f   : > { %v1031_v0 = vmin.f32 %v1029_v11, %v1030_v36  ;;  %v1097_v11 = vmin.f32 %v3224_v27, %v1096_v59  ;;  %v4567_v36 = vmin.f32 %v3216_v2, %v3235_v50  ;;  %v3336_v59 = vadd.s32 8, %v3317_v46 }
 0x160   : > { %v1102_v2 = vsel %vm4513_vm1, %v3325_v17, inf  ;;  %v3396_v50 = vadd.s32 112, %v3317_v46 }
 0x161   : > { %v1032_v13 = vrot.slane %v1031_v0, 4  ;;  %v786_v55 = vpop.f32.mrf.mxu2  ;;  %v1052_v19 = vmin.f32 %v4567_v36, %v3310_v63  ;;  %v1101_v1 = vmin.f32 %v1097_v11, %v1100_v45  ;;  %v3361_v45 = vsub.f32 %v3258_v49, %v3249_v35 }
 0x162   : > { %v3364_v11 = vadd.s32 56, %v3317_v46  ;;  %v3382_v35 = vadd.s32 96, %v3317_v46  ;;  %v1103_v36 = vmin.f32 %v1099_v18, %v1102_v2  ;;  %4572 = vst [vmem:[#allocation52_spill] sm:$0xff] %v3396_v50  ;;  %v3399_v17 = vsub.f32 %v3293_v41, %v786_v55 }
 0x163   : > { %v1033_v9 = vmin.f32 %v1031_v0, %v1032_v13  ;;  %v3354_v0 = vsub.f32 %v3245_v47, %v3241_v12  ;;  %4569 = vst [vmem:[#allocation49_spill] sm:$0xff] %v3361_v45  ;;  %v3373_v47 = vsub.f32 %v3243_v52, %v780_v51  ;;  %v3376_v12 = vadd.s32 80, %v3317_v46 }
 0x164   : > { %v3410_v49 = vadd.s32 128, %v3317_v46  ;;  %v3415_v55 = vadd.s32 136, %v3317_v46  ;;  %v3435_v50 = vadd.s32 152, %v3317_v46 }
 0x165   : > { %v1034_v27 = vrot.slane %v1033_v9, 2  ;;  %4568 = vst [vmem:[#allocation48_spill] sm:$0xff] %v3354_v0  ;;  %v1054_v51 = vmin.f32 %v1052_v19, %v3354_v0  ;;  %v697_v18 = vpop.f32.mrf.mxu1  ;;  %v3407_v19 = vadd.s32 120, %v3317_v46  ;;  %v1106_v4 = vsel %vm4513_vm1, %v3373_v47, inf }
 0x166   : > { %4570 = vst [vmem:[#allocation50_spill] sm:$0xff] %v3373_v47  ;;  %v3418_v0 = vadd.s32 144, %v3317_v46 }
 0x167   : > { %v1035_v13 = vmin.f32 %v1033_v9, %v1034_v27  ;;  %v3379_v9 = vadd.s32 88, %v3317_v46  ;;  %v3385_v27 = vsub.f32 %v3269_v38, %v783_v56  ;;  %v1104_v56 = vsel %vm4513_vm1, %v3361_v45, inf  ;;  %4573 = vst [vmem:[#allocation53_spill] sm:$0xff] %v3407_v19 }
 0x168   : > { %4574 = vst [vmem:[#allocation54_spill] sm:$0xff] %v3410_v49  ;;  %v3421_v45 = vsub.f32 %v3269_v38, %v694_v43  ;;  %v3428_v19 = vsub.f32 %v3293_v41, %v697_v18  ;;  %v1105_v47 = vmin.f32 %v1101_v1, %v1104_v56  ;;  %v1110_v38 = vsel %vm4513_vm1, %v3399_v17, inf }
 0x169   : > { %4571 = vst [vmem:[#allocation51_spill] sm:$0xff] %v3385_v27  ;;  %v1036_v63 = vrot.slane %v1035_v13, 1  ;;  %v789_v2 = vpop.f32.mrf.mxu2  ;;  %v1108_v52 = vsel %vm4513_vm1, %v3385_v27, inf  ;;  %v1107_v43 = vmin.f32 %v1103_v36, %v1106_v4  ;;  %v1056_v27 = vmin.f32 %v1054_v51, %v3404_v22 }
 0x16a   : > { %4575 = vst [vmem:[#allocation55_spill] sm:$0xff] %v3415_v55  ;;  %v3431_v49 = vsub.f32 %v3264_v14, %v789_v2  ;;  %v1055_v55 = vmin.f32 %v1053_v20, %v3393_v3  ;;  %v3444_v41 = vadd.s32 168, %v3317_v46  ;;  %v3447_v1 = vadd.s32 176, %v3317_v46 }
 0x16b   : > { %v3425_v21 = vmin.f32 %v1035_v13, %v1036_v63  ;;  %v3441_v63 = vadd.s32 160, %v3317_v46  ;;  %v1109_v13 = vmin.f32 %v1105_v47, %v1108_v52  ;;  %v3450_v20 = vadd.s32 184, %v3317_v46 }
 0x16c   : > { %4576 = vst [vmem:[#allocation56_spill] sm:$0xff] %v3444_v41  ;;  %v1057_v18 = vmin.f32 %v1055_v55, %v3421_v45  ;;  %v1111_v36 = vmin.f32 %v1107_v43, %v1110_v38  ;;  %v1058_v51 = vmin.f32 %v1056_v27, %v3428_v19  ;;  %v1112_v2 = vsel %vm4513_vm1, %v3431_v49, inf }
 0x16d   : > { %4577 = vst [vmem:[#allocation57_spill] sm:$0xff] %v3447_v1  ;;  %vm1121_vm2 = vcmp.eq.f32.partialorder %v3082_v25, %v3425_v21  ;;  %vm1124_vm3 = vcmp.eq.f32.partialorder %v3065_v15, %v3425_v21  ;;  %vm1127_vm4 = vcmp.eq.f32.partialorder %v3080_v23, %v3425_v21  ;;  %vm1130_vm5 = vcmp.eq.f32.partialorder %v3067_v16, %v3425_v21  ;;  %v700_v27 = vpop.f32.mrf.mxu1 }
 0x16e   : > { %vm1133_vm6 = vcmp.eq.f32.partialorder %v3093_v32, %v3425_v21  ;;  %vm1136_vm7 = vcmp.eq.f32.partialorder %v3110_v44, %v3425_v21  ;;  %vm1139_vm8 = vcmp.eq.f32.partialorder %v3126_v57, %v3425_v21  ;;  %vm1142_vm9 = vcmp.eq.f32.partialorder %v3139_v8, %v3425_v21 }
 0x16f   : > { %vm1145_vm10 = vcmp.eq.f32.partialorder %v3152_v26, %v3425_v21  ;;  %vm1148_vm11 = vcmp.eq.f32.partialorder %v3164_v40, %v3425_v21  ;;  %vm1151_vm12 = vcmp.eq.f32.partialorder %v3176_v54, %v3425_v21  ;;  %vm1154_vm13 = vcmp.eq.f32.partialorder %v3186_v10, %v3425_v21 }
 0x170   : > { %v1193_v15 = vsel %vm1121_vm2, %v3317_v46, 192  ;;  %v1196_v16 = vsel %vm1124_vm3, %v3336_v59, 192  ;;  %v1199_v23 = vsel %vm1127_vm4, %v3339_v30, 192  ;;  %v1202_v47 = vsel %vm1130_vm5, %v3342_v29, 192 }
 0x171   : > { %vm1160_vm15 = vcmp.eq.f32.partialorder %v3247_v42, %v3425_v21  ;;  %vm1163_vm0 = vcmp.eq.f32.partialorder %v3266_v62, %v3425_v21  ;;  %vm1166_vm1 = vcmp.eq.f32.partialorder %v3251_v7, %v3425_v21  ;;  %vm1169_vm14 = vcmp.eq.f32.partialorder %v3271_v33, %v3425_v21  ;;  %v4583_v62 = vld [vmem:[#allocation55_spill] sm:$0xff] }
 0x172   : > { %vm1172_vm2 = vcmp.eq.f32.partialorder %v3254_v24, %v3425_v21  ;;  %v1205_v25 = vsel %vm1133_vm6, %v3345_v58, 192  ;;  %v1208_v56 = vsel %vm1136_vm7, %v3348_v48, 192  ;;  %v1211_v4 = vsel %vm1139_vm8, %v3357_v28, 192 }
 0x173   : > { %vm1265_vm4 = vcmp.lt.s32.totalorder %v1193_v15, %v1199_v23  ;;  %vm1267_vm5 = vcmp.lt.s32.totalorder %v1196_v16, %v1202_v47  ;;  %v1113_v55 = vmin.f32 %v1109_v13, %v1112_v2  ;;  %v3514_v52 = vsub.f32 %v3264_v14, %v700_v27 }
 0x174   : > { %v1214_v32 = vsel %vm1142_vm9, %v3364_v11, 192  ;;  %v1217_v44 = vsel %vm1145_vm10, %v3367_v61, 192  ;;  %v1266_v57 = vsel %vm1265_vm4, %v1193_v15, %v1199_v23  ;;  %v1268_v38 = vsel %vm1267_vm5, %v1196_v16, %v1202_v47  ;;  %v4578_v15 = vld [vmem:[#allocation40_spill] sm:$0xff] }
 0x175   : > { %vm1181_vm7 = vcmp.eq.f32.partialorder %v3289_v37, %v3425_v21  ;;  %vm1184_vm8 = vcmp.eq.f32.partialorder %v3275_v5, %v3425_v21  ;;  %vm1269_vm3 = vcmp.lt.s32.totalorder %v1266_v57, %v1205_v25  ;;  %vm1271_vm6 = vcmp.lt.s32.totalorder %v1268_v38, %v1208_v56 }
 0x176   : > { %v1114_v14 = vmin.f32 %v1111_v36, %v1113_v55  ;;  %v1059_v43 = vmin.f32 %v1057_v18, %v3514_v52  ;;  %vm1187_vm9 = vcmp.eq.f32.partialorder %v3297_v39, %v3425_v21  ;;  %v1220_v8 = vsel %vm1148_vm11, %v3370_v60, 192  ;;  %v4587_v39 = vld [vmem:[#allocation12_spill] sm:$0xff] }
 0x177   : > { %v1223_v26 = vsel %vm1151_vm12, %v3376_v12, 192  ;;  %v1270_v13 = vsel %vm1269_vm3, %v1266_v57, %v1205_v25  ;;  %v1272_v2 = vsel %vm1271_vm6, %v1268_v38, %v1208_v56  ;;  %vm1190_vm10 = vcmp.eq.f32.partialorder %v4578_v15, %v3425_v21  ;;  %v4580_v25 = vld [vmem:[#allocation52_spill] sm:$0xff]  ;;  %v4582_v38 = vld [vmem:[#allocation54_spill] sm:$0xff] }
 0x178   : > { %vm1273_vm4 = vcmp.lt.s32.totalorder %v1270_v13, %v1211_v4  ;;  %vm1275_vm5 = vcmp.lt.s32.totalorder %v1272_v2, %v1214_v32  ;;  %v1115_v18 = vrot.slane %v1114_v14, 4  ;;  %v1060_v36 = vmin.f32 %v1058_v51, %v1059_v43  ;;  %v4590_v15 = vld [vmem:[#allocation18_spill] sm:$0xff] }
 0x179   : > { %v1226_v40 = vsel %vm1154_vm13, %v3379_v9, 192  ;;  %vm4579_vm11 = vcmp.eq.f32.partialorder %v3197_v34, %v3425_v21  ;;  %v1274_v16 = vsel %vm1273_vm4, %v1270_v13, %v1211_v4  ;;  %v1276_v23 = vsel %vm1275_vm5, %v1272_v2, %v1214_v32  ;;  %v4581_v32 = vld [vmem:[#allocation53_spill] sm:$0xff] }
 0x17a   : > { %v1229_v54 = vsel %vm4579_vm11, %v3382_v35, 192  ;;  %vm1277_vm12 = vcmp.lt.s32.totalorder %v1274_v16, %v1217_v44  ;;  %vm1279_vm3 = vcmp.lt.s32.totalorder %v1276_v23, %v1220_v8  ;;  %v1116_v47 = vmin.f32 %v1114_v14, %v1115_v18 }
 0x17b   : > { %v1061_v27 = vrot.slane %v1060_v36, 4  ;;  %v1232_v51 = vsel %vm1160_vm15, %v3388_v53, 192  ;;  %v1235_v10 = vsel %vm1163_vm0, %v4580_v25, 192  ;;  %v1278_v56 = vsel %vm1277_vm12, %v1274_v16, %v1217_v44 }
 0x17c   : > { %v1280_v55 = vsel %vm1279_vm3, %v1276_v23, %v1220_v8  ;;  %vm1281_vm13 = vcmp.lt.s32.totalorder %v1278_v56, %v1223_v26  ;;  %v1117_v34 = vrot.slane %v1116_v47, 2  ;;  %v1238_v57 = vsel %vm1166_vm1, %v4581_v32, 192 }
 0x17d   : > { %vm1283_vm6 = vcmp.lt.s32.totalorder %v1280_v55, %v1226_v40  ;;  %v1062_v4 = vmin.f32 %v1060_v36, %v1061_v27  ;;  %v1241_v42 = vsel %vm1169_vm14, %v4582_v38, 192  ;;  %v1282_v14 = vsel %vm1281_vm13, %v1278_v56, %v1223_v26  ;;  %v4591_v56 = vld [vmem:[#allocation20_spill] sm:$0xff] }
 0x17e   : > { %v1284_v43 = vsel %vm1283_vm6, %v1280_v55, %v1226_v40  ;;  %v1244_v44 = vsel %vm1172_vm2, %v4583_v62, 192  ;;  %vm1285_vm15 = vcmp.lt.s32.totalorder %v1282_v14, %v1229_v54  ;;  %v1118_v8 = vmin.f32 %v1116_v47, %v1117_v34  ;;  %v4586_v47 = vld [vmem:[#allocation10_spill] sm:$0xff] }
 0x17f   : > { %vm1287_vm0 = vcmp.lt.s32.totalorder %v1284_v43, %v1232_v51  ;;  %vm4584_vm4 = vcmp.eq.f32.partialorder %v3284_v31, %v3425_v21  ;;  %v1286_v13 = vsel %vm1285_vm15, %v1282_v14, %v1229_v54  ;;  %v1063_v18 = vrot.slane %v1062_v4, 2  ;;  %v4595_v14 = vld [vmem:[#allocation28_spill] sm:$0xff] }
 0x180   : > { %v1247_v7 = vsel %vm4584_vm4, %v3418_v0, 192  ;;  %v1288_v2 = vsel %vm1287_vm0, %v1284_v43, %v1232_v51  ;;  %vm4585_vm1 = vcmp.eq.f32.partialorder %v3262_v6, %v3425_v21  ;;  %vm1289_vm14 = vcmp.lt.s32.totalorder %v1286_v13, %v1235_v10  ;;  %v4589_v21 = vld [vmem:[#allocation16_spill] sm:$0xff] }
 0x181   : > { %v1250_v33 = vsel %vm4585_vm1, %v3435_v50, 192  ;;  %vm1291_vm5 = vcmp.lt.s32.totalorder %v1288_v2, %v1238_v57  ;;  %v1119_v24 = vrot.slane %v1118_v8, 1  ;;  %v1253_v26 = vsel %vm1181_vm7, %v3441_v63, 192 }
 0x182   : > { %v1256_v31 = vsel %vm1184_vm8, %v3444_v41, 192  ;;  %v1290_v36 = vsel %vm1289_vm14, %v1286_v13, %v1235_v10  ;;  %v1292_v40 = vsel %vm1291_vm5, %v1288_v2, %v1238_v57  ;;  %v1259_v6 = vsel %vm1187_vm9, %v3447_v1, 192  ;;  %v4588_v10 = vld [vmem:[#allocation14_spill] sm:$0xff]  ;;  %v4593_v57 = vld [vmem:[#allocation24_spill] sm:$0xff] }
 0x183   : > { %vm1293_vm2 = vcmp.lt.s32.totalorder %v1290_v36, %v1241_v42  ;;  %vm1295_vm11 = vcmp.lt.s32.totalorder %v1292_v40, %v1244_v44  ;;  %v3591_v54 = vmin.f32 %v1118_v8, %v1119_v24  ;;  %v1262_v37 = vsel %vm1190_vm10, %v3450_v20, 192  ;;  %v4596_v8 = vld [vmem:[#allocation30_spill] sm:$0xff]  ;;  %v4599_v2 = vld [vmem:[#allocation36_spill] sm:$0xff] }
 0x184   : > { %v1294_v16 = vsel %vm1293_vm2, %v1290_v36, %v1241_v42  ;;  %v1296_v23 = vsel %vm1295_vm11, %v1292_v40, %v1244_v44  ;;  %v3597_v5 = vmin.f32 %v1062_v4, %v1063_v18  ;;  %v4592_v4 = vld [vmem:[#allocation22_spill] sm:$0xff]  ;;  %v4603_v40 = vld [vmem:[#allocation43_spill] sm:$0xff] }
 0x185   : > { %vm1297_vm7 = vcmp.lt.s32.totalorder %v1294_v16, %v1247_v7  ;;  %vm1299_vm8 = vcmp.lt.s32.totalorder %v1296_v23, %v1250_v33  ;;  %vm1123_vm12 = vcmp.eq.f32.partialorder %v4586_v47, %v3591_v54  ;;  %vm1126_vm9 = vcmp.eq.f32.partialorder %v4587_v39, %v3591_v54  ;;  %v4594_v42 = vld [vmem:[#allocation26_spill] sm:$0xff] }
 0x186   : > { %v1298_v27 = vsel %vm1297_vm7, %v1294_v16, %v1247_v7  ;;  %v1300_v51 = vsel %vm1299_vm8, %v1296_v23, %v1250_v33  ;;  %vm1129_vm3 = vcmp.eq.f32.partialorder %v4588_v10, %v3591_v54  ;;  %vm1132_vm10 = vcmp.eq.f32.partialorder %v4589_v21, %v3591_v54  ;;  %v4597_v7 = vld [vmem:[#allocation32_spill] sm:$0xff]  ;;  %v4598_v13 = vld [vmem:[#allocation34_spill] sm:$0xff]  ;;  %v4607_v23 = vld [vmem:[#allocation51_spill] sm:$0xff] }
 0x187   : > { %vm1301_vm13 = vcmp.lt.s32.totalorder %v1298_v27, %v1253_v26  ;;  %vm1303_vm6 = vcmp.lt.s32.totalorder %v1300_v51, %v1256_v31  ;;  %vm1135_vm15 = vcmp.eq.f32.partialorder %v4590_v15, %v3591_v54  ;;  %vm1138_vm0 = vcmp.eq.f32.partialorder %v4591_v56, %v3591_v54  ;;  %v4600_v18 = vld [vmem:[#allocation38_spill] sm:$0xff] }
 0x188   : > { %v1302_v55 = vsel %vm1301_vm13, %v1298_v27, %v1253_v26  ;;  %v1304_v34 = vsel %vm1303_vm6, %v1300_v51, %v1256_v31  ;;  %vm1141_vm4 = vcmp.eq.f32.partialorder %v4592_v4, %v3591_v54  ;;  %vm1150_vm11 = vcmp.eq.f32.partialorder %v4595_v14, %v3591_v54  ;;  %v4601_v31 = vld [vmem:[#allocation41_spill] sm:$0xff]  ;;  %v4602_v36 = vld [vmem:[#allocation42_spill] sm:$0xff] }
 0x189   : > { %vm1305_vm14 = vcmp.lt.s32.totalorder %v1302_v55, %v1259_v6  ;;  %vm1307_vm5 = vcmp.lt.s32.totalorder %v1304_v34, %v1262_v37  ;;  %v1065_v26 = vrot.slane %v3597_v5, 1  ;;  %v4606_v16 = vld [vmem:[#allocation50_spill] sm:$0xff]  ;;  %vm1186_vm7 = vcmp.eq.f32.partialorder %v4607_v23, %v3591_v54 }
 0x18a   : > { %v1306_v43 = vsel %vm1305_vm14, %v1302_v55, %v1259_v6  ;;  %v1308_v44 = vsel %vm1307_vm5, %v1304_v34, %v1262_v37  ;;  %vm1168_vm14 = vcmp.eq.f32.partialorder %v4601_v31, %v3591_v54  ;;  %v4604_v6 = vld [vmem:[#allocation47_spill] sm:$0xff]  ;;  %v4605_v37 = vld [vmem:[#allocation49_spill] sm:$0xff]  ;;  %vm1189_vm5 = vcmp.eq.f32.partialorder %v3399_v17, %v3591_v54 }
 0x18b   : > { %vm1309_vm13 = vcmp.lt.s32.totalorder %v1306_v43, %v1308_v44  ;;  %vm1177_vm6 = vcmp.eq.f32.partialorder %v4604_v6, %v3591_v54  ;;  %vm1180_vm2 = vcmp.eq.f32.partialorder %v4605_v37, %v3591_v54  ;;  %vm1192_vm8 = vcmp.eq.f32.partialorder %v3431_v49, %v3591_v54 }
 0x18c   : > { %v1310_v33 = vsel %vm1309_vm13, %v1306_v43, %v1308_v44  ;;  %vm1183_vm13 = vcmp.eq.f32.partialorder %v4606_v16, %v3591_v54  ;;  %v1195_v51 = vsel %vm1123_vm12, %v3317_v46, 192  ;;  %v1198_v34 = vsel %vm1126_vm9, %v3336_v59, 192 }
 0x18d   : > { %v1311_v24 = vrot.slane %v1310_v33, 4  ;;  %v1201_v43 = vsel %vm1129_vm3, %v3339_v30, 192  ;;  %v1204_v44 = vsel %vm1132_vm10, %v3342_v29, 192  ;;  %v1207_v47 = vsel %vm1135_vm15, %v3345_v58, 192 }
 0x18e   : > { %v1210_v39 = vsel %vm1138_vm0, %v3348_v48, 192  ;;  %v1213_v10 = vsel %vm1141_vm4, %v3357_v28, 192  ;;  %vm4608_vm12 = vcmp.eq.f32.partialorder %v4593_v57, %v3591_v54  ;;  %vm4609_vm3 = vcmp.eq.f32.partialorder %v4594_v42, %v3591_v54 }
 0x18f   : > { %vm1312_vm1 = vcmp.lt.s32.totalorder %v1310_v33, %v1311_v24  ;;  %v1216_v21 = vsel %vm4608_vm12, %v3364_v11, 192  ;;  %v1219_v15 = vsel %vm4609_vm3, %v3367_v61, 192  ;;  %v1222_v56 = vsel %vm1150_vm11, %v3370_v60, 192 }
 0x190   : > { %v1313_v27 = vsel %vm1312_vm1, %v1310_v33, %v1311_v24  ;;  %vm4610_vm10 = vcmp.eq.f32.partialorder %v4596_v8, %v3591_v54  ;;  %vm4611_vm15 = vcmp.eq.f32.partialorder %v4597_v7, %v3591_v54  ;;  %vm4612_vm0 = vcmp.eq.f32.partialorder %v4598_v13, %v3591_v54 }
 0x191   : > { %v1314_v55 = vrot.slane %v1313_v27, 2  ;;  %v1225_v4 = vsel %vm4610_vm10, %v3376_v12, 192  ;;  %v1228_v57 = vsel %vm4611_vm15, %v3379_v9, 192  ;;  %v1231_v42 = vsel %vm4612_vm0, %v3382_v35, 192 }
 0x192   : > { %vm4613_vm4 = vcmp.eq.f32.partialorder %v4599_v2, %v3591_v54  ;;  %vm4614_vm1 = vcmp.eq.f32.partialorder %v4600_v18, %v3591_v54  ;;  %v1240_v7 = vsel %vm1168_vm14, %v4581_v32, 192  ;;  %vm4615_vm11 = vcmp.eq.f32.partialorder %v4602_v36, %v3591_v54 }
 0x193   : > { %vm1315_vm9 = vcmp.lt.s32.totalorder %v1313_v27, %v1314_v55  ;;  %v1234_v14 = vsel %vm4613_vm4, %v3388_v53, 192  ;;  %v1237_v8 = vsel %vm4614_vm1, %v4580_v25, 192  ;;  %v1243_v13 = vsel %vm4615_vm11, %v4582_v38, 192 }
 0x194   : > { %v3708_v33 = vsel %vm1315_vm9, %v1313_v27, %v1314_v55  ;;  %vm4616_vm12 = vcmp.eq.f32.partialorder %v4603_v40, %v3591_v54  ;;  %v1249_v18 = vsel %vm1177_vm6, %v3418_v0, 192  ;;  %v1252_v24 = vsel %vm1180_vm2, %v3435_v50, 192 }
 0x195   : > { %v1246_v2 = vsel %vm4616_vm12, %v4583_v62, 192  ;;  %vm4617_vm14 = vcmask 523264   ;;  %v1255_v40 = vsel %vm1183_vm13, %v3441_v63, 192  ;;  %v3740_v6 = vsel %vm1186_vm7, %v3444_v41, 192 }
 0x196   : > { %v1375_v31 = vsel %vm4617_vm14, %v1195_v51, 2147483647  ;;  %vm4618_vm9 = vmmov %vm4617_vm14  ;;  %v3748_v51 = vsel %vm1189_vm5, %v3447_v1, 192  ;;  %v3754_v16 = vsel %vm1192_vm8, %v3450_v20, 192 }
 0x197   : > { %v1376_v36 = vsel %vm4618_vm9, %v1198_v34, 2147483647  ;;  %vm4619_vm6 = vmmov %vm4618_vm9 }
 0x198   : > { %v1377_v27 = vsel %vm4619_vm6, %v1201_v43, 2147483647  ;;  %vm4620_vm3 = vmmov %vm4619_vm6 }
 0x199   : > { %v1380_v37 = vsel %vm4620_vm3, %v1204_v44, 2147483647  ;;  %vm1378_vm2 = vcmp.lt.s32.totalorder %v1375_v31, %v1377_v27  ;;  %vm4621_vm7 = vmmov %vm4620_vm3  ;;  %v3760_v44 = vmin.f32 %v3597_v5, %v1065_v26 }
 0x19a   : > { %vm1381_vm13 = vcmp.lt.s32.totalorder %v1376_v36, %v1380_v37  ;;  %v1379_v23 = vsel %vm1378_vm2, %v1375_v31, %v1377_v27  ;;  %v1383_v34 = vsel %vm4621_vm7, %v1207_v47, 2147483647  ;;  %vm4622_vm10 = vmmov %vm4620_vm3 }
 0x19b   : > { %v1382_v55 = vsel %vm1381_vm13, %v1376_v36, %v1380_v37  ;;  %v1386_v43 = vsel %vm4622_vm10, %v1210_v39, 2147483647  ;;  %vm1384_vm15 = vcmp.lt.s32.totalorder %v1379_v23, %v1383_v34  ;;  %vm4623_vm4 = vmmov %vm4620_vm3 }
 0x19c   : > { %vm1387_vm0 = vcmp.lt.s32.totalorder %v1382_v55, %v1386_v43  ;;  %v1389_v17 = vsel %vm4623_vm4, %v1213_v10, 2147483647  ;;  %v1385_v1 = vsel %vm1384_vm15, %v1379_v23, %v1383_v34  ;;  %vm4624_vm5 = vmmov %vm4620_vm3 }
 0x19d   : > { %v1388_v41 = vsel %vm1387_vm0, %v1382_v55, %v1386_v43  ;;  %v1392_v49 = vsel %vm4624_vm5, %v1216_v21, 2147483647  ;;  %vm4625_vm8 = vmmov %vm4620_vm3  ;;  %vm1390_vm1 = vcmp.lt.s32.totalorder %v1385_v1, %v1389_v17  ;;  %v4643_v43 = vld [vmem:[#allocation23_spill] sm:$0xff] }
 0x19e   : > { %v1395_v54 = vsel %vm4625_vm8, %v1219_v15, 2147483647  ;;  %vm1393_vm11 = vcmp.lt.s32.totalorder %v1388_v41, %v1392_v49  ;;  %vm4626_vm12 = vmmov %vm4620_vm3  ;;  %v1391_v39 = vsel %vm1390_vm1, %v1385_v1, %v1389_v17  ;;  %v4644_v17 = vld [vmem:[#allocation25_spill] sm:$0xff] }
 0x19f   : > { %v1398_v31 = vsel %vm4626_vm12, %v1222_v56, 2147483647  ;;  %vm4627_vm14 = vmmov %vm4620_vm3  ;;  %v1394_v36 = vsel %vm1393_vm11, %v1388_v41, %v1392_v49  ;;  %v1422_v41 = vsel %vm4624_vm5, %v1246_v2, 2147483647  ;;  %v4639_v2 = vld [vmem:[#allocation15_spill] sm:$0xff] }
 0x1a0   : > { %v1401_v47 = vsel %vm4627_vm14, %v1225_v4, 2147483647  ;;  %vm4628_vm9 = vmmov %vm4620_vm3  ;;  %vm1399_vm2 = vcmp.lt.s32.totalorder %v1394_v36, %v1398_v31  ;;  %v4645_v49 = vld [vmem:[#allocation27_spill] sm:$0xff] }
 0x1a1   : > { %v1404_v27 = vsel %vm4628_vm9, %v1228_v57, 2147483647  ;;  %vm4629_vm6 = vmmov %vm4620_vm3  ;;  %vm1396_vm3 = vcmp.lt.s32.totalorder %v1391_v39, %v1395_v54  ;;  %v1400_v15 = vsel %vm1399_vm2, %v1394_v36, %v1398_v31  ;;  %v4648_v36 = vld [vmem:[#allocation33_spill] sm:$0xff] }
 0x1a2   : > { %v1407_v10 = vsel %vm4629_vm6, %v1231_v42, 2147483647  ;;  %vm4630_vm13 = vmmov %vm4623_vm4  ;;  %v1397_v21 = vsel %vm1396_vm3, %v1391_v39, %v1395_v54  ;;  %vm1128_vm3 = vcmp.eq.f32.partialorder %v4639_v2, %v3760_v44  ;;  %v4646_v54 = vld [vmem:[#allocation29_spill] sm:$0xff]  ;;  %v4647_v39 = vld [vmem:[#allocation31_spill] sm:$0xff] }
 0x1a3   : > { %v1410_v5 = vsel %vm4630_vm13, %v1234_v14, 2147483647  ;;  %vm4631_vm7 = vmmov %vm4623_vm4  ;;  %vm1402_vm0 = vcmp.lt.s32.totalorder %v1397_v21, %v1401_v47 }
 0x1a4   : > { %v1413_v26 = vsel %vm4631_vm7, %v1237_v8, 2147483647  ;;  %vm4632_vm10 = vmmov %vm4623_vm4  ;;  %v1403_v4 = vsel %vm1402_vm0, %v1397_v21, %v1401_v47  ;;  %v4637_v8 = vld [vmem:[#allocation11_spill] sm:$0xff] }
 0x1a5   : > { %v1416_v37 = vsel %vm4632_vm10, %v1240_v7, 2147483647  ;;  %vm4633_vm15 = vmmov %vm4623_vm4  ;;  %vm1405_vm4 = vcmp.lt.s32.totalorder %v1400_v15, %v1404_v27  ;;  %vm1408_vm12 = vcmp.lt.s32.totalorder %v1403_v4, %v1407_v10  ;;  %vm1122_vm9 = vcmp.eq.f32.partialorder %v4637_v8, %v3760_v44  ;;  %v4638_v7 = vld [vmem:[#allocation13_spill] sm:$0xff]  ;;  %v4654_v8 = vld [vmem:[#allocation44_spill] sm:$0xff] }
 0x1a6   : > { %v1419_v56 = vsel %vm4633_vm15, %v1243_v13, 2147483647  ;;  %vm4634_vm8 = vmmov %vm4624_vm5  ;;  %v1406_v57 = vsel %vm1405_vm4, %v1400_v15, %v1404_v27  ;;  %vm1125_vm6 = vcmp.eq.f32.partialorder %v4638_v7, %v3760_v44  ;;  %v1409_v13 = vsel %vm1408_vm12, %v1403_v4, %v1407_v10  ;;  %v4649_v27 = vld [vmem:[#allocation35_spill] sm:$0xff]  ;;  %v4650_v10 = vld [vmem:[#allocation37_spill] sm:$0xff] }
 0x1a7   : > { %v1425_v1 = vsel %vm4634_vm8, %v1249_v18, 2147483647  ;;  %vm4635_vm1 = vmmov %vm4624_vm5  ;;  %vm1411_vm14 = vcmp.lt.s32.totalorder %v1406_v57, %v1410_v5  ;;  %v4640_v18 = vld [vmem:[#allocation17_spill] sm:$0xff]  ;;  %vm1414_vm13 = vcmp.lt.s32.totalorder %v1409_v13, %v1413_v26  ;;  %vm1161_vm0 = vcmp.eq.f32.partialorder %v4650_v10, %v3760_v44  ;;  %v4651_v15 = vld [vmem:[#allocation39_spill] sm:$0xff] }
 0x1a8   : > { %v1428_v42 = vsel %vm4635_vm1, %v1252_v24, 2147483647  ;;  %vm4636_vm11 = vmmov %vm4635_vm1  ;;  %v1412_v23 = vsel %vm1411_vm14, %v1406_v57, %v1410_v5  ;;  %vm1131_vm2 = vcmp.eq.f32.partialorder %v4640_v18, %v3760_v44  ;;  %v4641_v24 = vld [vmem:[#allocation19_spill] sm:$0xff]  ;;  %v1415_v55 = vsel %vm1414_vm13, %v1409_v13, %v1413_v26 }
 0x1a9   : > { %v1431_v14 = vsel %vm4636_vm11, %v1255_v40, 2147483647  ;;  %vm1417_vm7 = vcmp.lt.s32.totalorder %v1412_v23, %v1416_v37  ;;  %vm1134_vm10 = vcmp.eq.f32.partialorder %v4641_v24, %v3760_v44  ;;  %v4642_v40 = vld [vmem:[#allocation21_spill] sm:$0xff]  ;;  %vm1420_vm5 = vcmp.lt.s32.totalorder %v1415_v55, %v1419_v56  ;;  %vm4652_vm14 = vmmov %vm4636_vm11 }
 0x1aa   : > { %vm1137_vm15 = vcmp.eq.f32.partialorder %v4642_v40, %v3760_v44  ;;  %v1418_v34 = vsel %vm1417_vm7, %v1412_v23, %v1416_v37  ;;  %vm1146_vm1 = vcmp.eq.f32.partialorder %v4645_v49, %v3760_v44  ;;  %v1421_v31 = vsel %vm1420_vm5, %v1415_v55, %v1419_v56  ;;  %vm4653_vm4 = vmmov %vm4636_vm11 }
 0x1ab   : > { %vm1423_vm8 = vcmp.lt.s32.totalorder %v1418_v34, %v1422_v41  ;;  %vm1426_vm13 = vcmp.lt.s32.totalorder %v1421_v31, %v1425_v1  ;;  %v1434_v21 = vsel %vm4636_vm11, %v3740_v6, 2147483647  ;;  %v1440_v4 = vsel %vm4653_vm4, %v3754_v16, 2147483647 }
 0x1ac   : > { %v1424_v47 = vsel %vm1423_vm8, %v1418_v34, %v1422_v41  ;;  %v1427_v5 = vsel %vm1426_vm13, %v1421_v31, %v1425_v1  ;;  %v1437_v41 = vsel %vm4652_vm14, %v3748_v51, 2147483647  ;;  %v1317_v57 = vrot.slane %v3708_v33, 1  ;;  %v4656_v34 = vld [vmem:[#allocation46_spill] sm:$0xff] }
 0x1ad   : > { %vm1429_vm7 = vcmp.lt.s32.totalorder %v1424_v47, %v1428_v42  ;;  %vm1432_vm8 = vcmp.lt.s32.totalorder %v1427_v5, %v1431_v14  ;;  %v1197_v51 = vsel %vm1125_vm6, %v3336_v59, 192  ;;  %v1200_v16 = vsel %vm1128_vm3, %v3339_v30, 192 }
 0x1ae   : > { %v1430_v26 = vsel %vm1429_vm7, %v1424_v47, %v1428_v42  ;;  %v1433_v37 = vsel %vm1432_vm8, %v1427_v5, %v1431_v14  ;;  %vm1318_vm5 = vcmp.lt.s32.totalorder %v3708_v33, %v1317_v57  ;;  %v1194_v14 = vsel %vm1122_vm9, %v3317_v46, 192 }
 0x1af   : > { %vm1435_vm12 = vcmp.lt.s32.totalorder %v1430_v26, %v1434_v21  ;;  %vm1438_vm13 = vcmp.lt.s32.totalorder %v1433_v37, %v1437_v41  ;;  %v1203_v13 = vsel %vm1131_vm2, %v3342_v29, 192  ;;  %v3833_v23 = vsel %vm1318_vm5, %v3708_v33, %v1317_v57  ;;  %v4655_v33 = vld [vmem:[#allocation45_spill] sm:$0xff] }
 0x1b0   : > { %v1436_v56 = vsel %vm1435_vm12, %v1430_v26, %v1434_v21  ;;  %v1439_v1 = vsel %vm1438_vm13, %v1433_v37, %v1437_v41  ;;  %vm1167_vm9 = vcmp.eq.f32.partialorder %v4654_v8, %v3760_v44  ;;  %v1206_v7 = vsel %vm1134_vm10, %v3345_v58, 192  ;;  %v4659_v26 = vld [vmem:[#allocation48_spill] sm:$0xff] }
 0x1b1   : > { %vm1441_vm7 = vcmp.lt.s32.totalorder %v1436_v56, %v1440_v4  ;;  %vm1320_vm6 = vcmp.lt.s32.totalorder %v1194_v14, %v1200_v16  ;;  %vm1322_vm4 = vcmp.lt.s32.totalorder %v1197_v51, %v1203_v13  ;;  %v1209_v2 = vsel %vm1137_vm15, %v3348_v48, 192 }
 0x1b2   : > { %v1442_v42 = vsel %vm1441_vm7, %v1436_v56, %v1440_v4  ;;  %v1321_v18 = vsel %vm1320_vm6, %v1194_v14, %v1200_v16  ;;  %v1323_v55 = vsel %vm1322_vm4, %v1197_v51, %v1203_v13  ;;  %vm1535_vm3 = vcmp.eq.s32.totalorder %v4581_v32, %v3833_v23 }
 0x1b3   : > { %vm1443_vm11 = vcmp.lt.s32.totalorder %v1439_v1, %v1442_v42  ;;  %vm1170_vm2 = vcmp.eq.f32.partialorder %v4655_v33, %v3760_v44  ;;  %vm1173_vm12 = vcmp.eq.f32.partialorder %v4656_v34, %v3760_v44  ;;  %vm1324_vm14 = vcmp.lt.s32.totalorder %v1321_v18, %v1206_v7  ;;  %v4667_v34 = vld [vmem:[#allocation56_spill] sm:$0xff] }
 0x1b4   : > { %v3813_v6 = vsel %vm1443_vm11, %v1439_v1, %v1442_v42  ;;  %vm1326_vm10 = vcmp.lt.s32.totalorder %v1323_v55, %v1209_v2  ;;  %vm4657_vm5 = vcmp.eq.f32.partialorder %v4643_v43, %v3760_v44  ;;  %vm4658_vm15 = vcmp.eq.f32.partialorder %v4644_v17, %v3760_v44 }
 0x1b5   : > { %v1212_v24 = vsel %vm4657_vm5, %v3357_v28, 192  ;;  %v1215_v40 = vsel %vm4658_vm15, %v3364_v11, 192  ;;  %v1325_v31 = vsel %vm1324_vm14, %v1321_v18, %v1206_v7  ;;  %v1327_v47 = vsel %vm1326_vm10, %v1323_v55, %v1209_v2 }
 0x1b6   : > { %v2740_v5 = vmov 1.0   ;;  %vm1176_vm8 = vcmp.eq.f32.partialorder %v4659_v26, %v3760_v44  ;;  %vm1179_vm13 = vcmp.eq.f32.partialorder %v3393_v3, %v3760_v44  ;;  %vm1328_vm7 = vcmp.lt.s32.totalorder %v1325_v31, %v1212_v24 }
 0x1b7   : > { %2433 = vmatpush.msk.msrb.mxu0 %vm1535_vm3, %v2740_v5  ;;  %2524 = vmatpush.msk.msra.mxu3 %vm1535_vm3, %v2740_v5  ;;  %vm1330_vm11 = vcmp.lt.s32.totalorder %v1327_v47, %v1215_v40  ;;  %vm1532_vm6 = vcmp.eq.s32.totalorder %v4580_v25, %v3833_v23  ;;  %v1218_v43 = vsel %vm1146_vm1, %v3367_v61, 192  ;;  %vm4660_vm4 = vcmp.eq.f32.partialorder %v4646_v54, %v3760_v44 }
 0x1b8   : > { %v1221_v17 = vsel %vm4660_vm4, %v3370_v60, 192  ;;  %v1329_v21 = vsel %vm1328_vm7, %v1325_v31, %v1212_v24  ;;  %v1331_v37 = vsel %vm1330_vm11, %v1327_v47, %v1215_v40  ;;  %vm1182_vm3 = vcmp.eq.f32.partialorder %v3404_v22, %v3760_v44 }
 0x1b9   : > { %2434 = vmatpush.msk.msrb.mxu0 %vm1532_vm6, %v2740_v5  ;;  %2525 = vmatpush.msk.msra.mxu3 %vm1532_vm6, %v2740_v5  ;;  %vm1185_vm14 = vcmp.eq.f32.partialorder %v3421_v45, %v3760_v44  ;;  %vm1332_vm10 = vcmp.lt.s32.totalorder %v1329_v21, %v1218_v43  ;;  %vm1334_vm5 = vcmp.lt.s32.totalorder %v1331_v37, %v1221_v17  ;;  %v1445_v4 = vrot.slane %v3813_v6, 4 }
 0x1ba   : > { %vm1529_vm1 = vcmp.eq.s32.totalorder %v3388_v53, %v3833_v23  ;;  %vm4661_vm15 = vcmp.eq.f32.partialorder %v4647_v39, %v3760_v44  ;;  %vm4662_vm7 = vcmp.eq.f32.partialorder %v4648_v36, %v3760_v44  ;;  %v1333_v56 = vsel %vm1332_vm10, %v1329_v21, %v1218_v43 }
 0x1bb   : > { %v1224_v49 = vsel %vm4661_vm15, %v3376_v12, 192  ;;  %v1227_v54 = vsel %vm4662_vm7, %v3379_v9, 192  ;;  %v1335_v41 = vsel %vm1334_vm5, %v1331_v37, %v1221_v17  ;;  %2435 = vmatpush.msk.msrb.mxu0 %vm1529_vm1, %v2740_v5  ;;  %2526 = vmatpush.msk.msra.mxu3 %vm1529_vm1, %v2740_v5  ;;  %vm1526_vm4 = vcmp.eq.s32.totalorder %v3382_v35, %v3833_v23 }
 0x1bc   : > { %vm1336_vm11 = vcmp.lt.s32.totalorder %v1333_v56, %v1224_v49  ;;  %vm1338_vm6 = vcmp.lt.s32.totalorder %v1335_v41, %v1227_v54  ;;  %vm4663_vm15 = vcmp.eq.f32.partialorder %v4649_v27, %v3760_v44  ;;  %v1233_v36 = vsel %vm1161_vm0, %v3388_v53, 192 }
 0x1bd   : > { %v1230_v39 = vsel %vm4663_vm15, %v3382_v35, 192  ;;  %v1337_v57 = vsel %vm1336_vm11, %v1333_v56, %v1224_v49  ;;  %v1339_v1 = vsel %vm1338_vm6, %v1335_v41, %v1227_v54  ;;  %2436 = vmatpush.msk.msrb.mxu0 %vm1526_vm4, %v2740_v5  ;;  %2527 = vmatpush.msk.msra.mxu3 %vm1526_vm4, %v2740_v5  ;;  %vm1188_vm10 = vcmp.eq.f32.partialorder %v3428_v19, %v3760_v44  ;;  %v1902_v56 = vld [vmem:[#allocation3 + $0x50] sm:$0xff] }
 0x1be   : > { %vm1340_vm5 = vcmp.lt.s32.totalorder %v1337_v57, %v1230_v39  ;;  %vm1342_vm1 = vcmp.lt.s32.totalorder %v1339_v1, %v1233_v36  ;;  %vm1523_vm7 = vcmp.eq.s32.totalorder %v3379_v9, %v3833_v23  ;;  %vm4664_vm15 = vcmp.eq.f32.partialorder %v4651_v15, %v3760_v44 }
 0x1bf   : > { %v1236_v27 = vsel %vm4664_vm15, %v4580_v25, 192  ;;  %v1239_v10 = vsel %vm1167_vm9, %v4581_v32, 192  ;;  %v1341_v42 = vsel %vm1340_vm5, %v1337_v57, %v1230_v39  ;;  %v1343_v14 = vsel %vm1342_vm1, %v1339_v1, %v1233_v36  ;;  %2437 = vmatpush.msk.msrb.mxu0 %vm1523_vm7, %v2740_v5  ;;  %2528 = vmatpush.msk.msra.mxu3 %vm1523_vm7, %v2740_v5  ;;  %v4010_v39 = vld [vmem:[%s4672_s2 + $0x20] sm:$0xff] }
 0x1c0   : > { %vm3921_vm0 = vcmp.lt.s32.totalorder %v3813_v6, %v1445_v4  ;;  %vm1344_vm11 = vcmp.lt.s32.totalorder %v1341_v42, %v1236_v27  ;;  %vm1346_vm6 = vcmp.lt.s32.totalorder %v1343_v14, %v1239_v10  ;;  %vm1520_vm4 = vcmp.eq.s32.totalorder %v3376_v12, %v3833_v23  ;;  %v4015_v36 = vld [vmem:[%s4672_s2] sm:$0xff] }
 0x1c1   : > { %v1242_v15 = vsel %vm1170_vm2, %v4582_v38, 192  ;;  %v1245_v16 = vsel %vm1173_vm12, %v4583_v62, 192  ;;  %v1345_v13 = vsel %vm1344_vm11, %v1341_v42, %v1236_v27  ;;  %v1347_v8 = vsel %vm1346_vm6, %v1343_v14, %v1239_v10  ;;  %2438 = vmatpush.msk.msrb.mxu0 %vm1520_vm4, %v2740_v5  ;;  %2529 = vmatpush.msk.msra.mxu3 %vm1520_vm4, %v2740_v5  ;;  %v4042_v10 = vld [vmem:[%s4672_s2 + $0x30] sm:$0xff] }
 0x1c2   : > { %vm1191_vm9 = vcmp.eq.f32.partialorder %v3514_v52, %v3760_v44  ;;  %vm1348_vm5 = vcmp.lt.s32.totalorder %v1345_v13, %v1242_v15  ;;  %vm1350_vm1 = vcmp.lt.s32.totalorder %v1347_v8, %v1245_v16  ;;  %vm1517_vm7 = vcmp.eq.s32.totalorder %v3370_v60, %v3833_v23  ;;  %v4047_v42 = vld [vmem:[%s4672_s2 + $0x10] sm:$0xff] }
 0x1c3   : > { %v1248_v7 = vsel %vm1176_vm8, %v3418_v0, 192  ;;  %v1251_v2 = vsel %vm1179_vm13, %v3435_v50, 192  ;;  %v1349_v18 = vsel %vm1348_vm5, %v1345_v13, %v1242_v15  ;;  %v1351_v55 = vsel %vm1350_vm1, %v1347_v8, %v1245_v16  ;;  %2439 = vmatpush.msk.msrb.mxu0 %vm1517_vm7, %v2740_v5  ;;  %2530 = vmatpush.msk.msra.mxu3 %vm1517_vm7, %v2740_v5  ;;  %v4079_v13 = vld [vmem:[%s4672_s2 + $0x8] sm:$0xff] }
 0x1c4   : > { %v1447_v33 = vsel %vm3921_vm0, %v3813_v6, %v1445_v4  ;;  %vm1352_vm2 = vcmp.lt.s32.totalorder %v1349_v18, %v1248_v7  ;;  %vm1354_vm12 = vcmp.lt.s32.totalorder %v1351_v55, %v1251_v2  ;;  %vm1514_vm8 = vcmp.eq.s32.totalorder %v3367_v61, %v3833_v23  ;;  %v4668_v6 = vld [vmem:[#allocation57_spill] sm:$0xff]  ;;  %v4118_v8 = vld [vmem:[%s4672_s2 + $0x28] sm:$0xff] }
 0x1c5   : > { %v1254_v3 = vsel %vm1182_vm3, %v3441_v63, 192  ;;  %v1257_v24 = vsel %vm1185_vm14, %v4667_v34, 192  ;;  %v1353_v40 = vsel %vm1352_vm2, %v1349_v18, %v1248_v7  ;;  %v1355_v31 = vsel %vm1354_vm12, %v1351_v55, %v1251_v2  ;;  %2440 = vmatpush.msk.msrb.mxu0 %vm1514_vm8, %v2740_v5  ;;  %2531 = vmatpush.msk.msra.mxu3 %vm1514_vm8, %v2740_v5  ;;  %v4137_v7 = vld [vmem:[%s4672_s2 + $0x38] sm:$0xff] }
 0x1c6   : > { %vm1356_vm13 = vcmp.lt.s32.totalorder %v1353_v40, %v1254_v3  ;;  %vm1358_vm15 = vcmp.lt.s32.totalorder %v1355_v31, %v1257_v24  ;;  %vm1511_vm0 = vcmp.eq.s32.totalorder %v3364_v11, %v3833_v23  ;;  %v1260_v22 = vsel %vm1188_vm10, %v4668_v6, 192 }
 0x1c7   : > { %v1263_v45 = vsel %vm1191_vm9, %v3450_v20, 192  ;;  %v1357_v47 = vsel %vm1356_vm13, %v1353_v40, %v1254_v3  ;;  %v1359_v26 = vsel %vm1358_vm15, %v1355_v31, %v1257_v24  ;;  %2441 = vmatpush.msk.msrb.mxu0 %vm1511_vm0, %v2740_v5  ;;  %2532 = vmatpush.msk.msra.mxu3 %vm1511_vm0, %v2740_v5  ;;  %v1448_v43 = vrot.slane %v1447_v33, 2  ;;  %v1893_v3 = vld [vmem:[#allocation3 + $0x8] sm:$0xff]  ;;  %v2615_v24 = vld [vmem:[%s2848_s19] sm:$0xff] }
 0x1c8   : > { %vm1360_vm3 = vcmp.lt.s32.totalorder %v1357_v47, %v1260_v22  ;;  %vm1362_vm14 = vcmp.lt.s32.totalorder %v1359_v26, %v1263_v45  ;;  %vm1508_vm11 = vcmp.eq.s32.totalorder %v3357_v28, %v3833_v23  ;;  %vm1505_vm6 = vcmp.eq.s32.totalorder %v3348_v48, %v3833_v23 }
 0x1c9   : > { %v1361_v17 = vsel %vm1360_vm3, %v1357_v47, %v1260_v22  ;;  %v1363_v19 = vsel %vm1362_vm14, %v1359_v26, %v1263_v45  ;;  %2442 = vmatpush.msk.msrb.mxu0 %vm1508_vm11, %v2740_v5  ;;  %2533 = vmatpush.msk.msra.mxu3 %vm1508_vm11, %v2740_v5  ;;  %vm1449_vm4 = vcmp.lt.s32.totalorder %v1447_v33, %v1448_v43  ;;  %vm1480_vm7 = vcmask 1040384  }
 0x1ca   : > { %vm1364_vm10 = vcmp.lt.s32.totalorder %v1361_v17, %v1363_v19  ;;  %vm1502_vm9 = vcmp.eq.s32.totalorder %v3345_v58, %v3833_v23  ;;  %vm1499_vm1 = vcmp.eq.s32.totalorder %v3342_v29, %v3833_v23  ;;  %v1450_v21 = vsel %vm1449_vm4, %v1447_v33, %v1448_v43  ;;  %v1896_v43 = vld [vmem:[#allocation3 + $0x20] sm:$0xff] }
 0x1cb   : > { %v1365_v52 = vsel %vm1364_vm10, %v1361_v17, %v1363_v19  ;;  %2443 = vmatpush.msk.msrb.mxu0 %vm1505_vm6, %v2740_v5  ;;  %2534 = vmatpush.msk.msra.mxu3 %vm1505_vm6, %v2740_v5  ;;  %vm1482_vm2 = vcmask 1041408   ;;  %vm1496_vm12 = vcmp.eq.s32.totalorder %v3339_v30, %v3833_v23  ;;  %v4669_v54 = vlaneseq }
 0x1cc   : > { %v1366_v44 = vrot.slane %v1365_v52, 4  ;;  %vm1493_vm15 = vcmp.eq.s32.totalorder %v3336_v59, %v3833_v23  ;;  %v1451_v41 = vrot.slane %v1450_v21, 1  ;;  %vm1490_vm0 = vcmp.eq.s32.totalorder %v3317_v46, %v3833_v23 }
 0x1cd   : > { %2444 = vmatpush.msk.msrb.mxu0 %vm1502_vm9, %v2740_v5  ;;  %2535 = vmatpush.msk.msra.mxu3 %vm1502_vm9, %v2740_v5  ;;  %vm3997_vm8 = vcmp.lt.s32.totalorder %v4669_v54, 320  ;;  %vm1559_vm3 = vcmp.eq.s32.totalorder %v3450_v20, %v3833_v23  ;;  %vm1556_vm10 = vcmp.eq.s32.totalorder %v4668_v6, %v3833_v23  ;;  %vm1553_vm6 = vcmp.eq.s32.totalorder %v4667_v34, %v3833_v23 }
 0x1ce   : > { %vm1367_vm5 = vcmp.lt.s32.totalorder %v1365_v52, %v1366_v44  ;;  %vm1452_vm14 = vcmp.lt.s32.totalorder %v1450_v21, %v1451_v41  ;;  %vm1550_vm4 = vcmp.eq.s32.totalorder %v3441_v63, %v3833_v23  ;;  %vm1547_vm9 = vcmp.eq.s32.totalorder %v3435_v50, %v3833_v23 }
 0x1cf   : > { %v1368_v37 = vsel %vm1367_vm5, %v1365_v52, %v1366_v44  ;;  %2445 = vmatpush.msk.msrb.mxu0 %vm1499_vm1, %v2740_v5  ;;  %2536 = vmatpush.msk.msra.mxu3 %vm1499_vm1, %v2740_v5  ;;  %v4032_v1 = vsel %vm1452_vm14, %v1450_v21, %v1451_v41  ;;  %vm1544_vm5 = vcmp.eq.s32.totalorder %v3418_v0, %v3833_v23  ;;  %v1899_v21 = vld [vmem:[#allocation3 + $0x38] sm:$0xff] }
 0x1d0   : > { %v1369_v49 = vrot.slane %v1368_v37, 2  ;;  %v1950_v14 = vrot.slane %v4032_v1, 6  ;;  %vm1541_vm1 = vcmp.eq.s32.totalorder %v4583_v62, %v3833_v23 }
 0x1d1   : > { %2446 = vmatpush.msk.msrb.mxu0 %vm1496_vm12, %v2740_v5  ;;  %2537 = vmatpush.msk.msra.mxu3 %vm1496_vm12, %v2740_v5  ;;  %vm1538_vm12 = vcmp.eq.s32.totalorder %v4582_v38, %v3833_v23 }
 0x1d2   : > { %vm1370_vm13 = vcmp.lt.s32.totalorder %v1368_v37, %v1369_v49 }
 0x1d3   : > { %v1371_v4 = vsel %vm1370_vm13, %v1368_v37, %v1369_v49  ;;  %2447 = vmatpush.msk.msrb.mxu0 %vm1493_vm15, %v2740_v5  ;;  %2538 = vmatpush.msk.msra.mxu3 %vm1493_vm15, %v2740_v5 }
 0x1d4   : > { %v1372_v57 = vrot.slane %v1371_v4, 1 }
 0x1d5   : > { %2448 = vmatpush.msk.msrb.mxu0 %vm1490_vm0, %v2740_v5  ;;  %2539 = vmatpush.msk.msra.mxu3 %vm1490_vm0, %v2740_v5 }
 0x1d6   : > { %1740 = vmatmul.f32.vlgmr.msra.gmra.mxu3 %v4010_v39  ;;  %1734 = vmatmul.f32.vlgmr.msrb.gmra.mxu0 %v4015_v36  ;;  %vm1373_vm11 = vcmp.lt.s32.totalorder %v1371_v4, %v1372_v57 }
 0x1d7   : > { %2449 = vmatpush.msk.msrb.mxu3 %vm1559_vm3, %v2740_v5  ;;  %v4036_v27 = vsel %vm1373_vm11, %v1371_v4, %v1372_v57 }
 0x1d8   : > { %v1949_v51 = vrot.slane %v4036_v27, 7  ;;  %vm1530_vm13 = vcmp.eq.s32.totalorder %v3388_v53, %v4036_v27  ;;  %vm1527_vm15 = vcmp.eq.s32.totalorder %v3382_v35, %v4036_v27  ;;  %vm1524_vm0 = vcmp.eq.s32.totalorder %v3379_v9, %v4036_v27 }
 0x1d9   : > { %2450 = vmatpush.msk.msrb.mxu3 %vm1556_vm10, %v2740_v5  ;;  %vm1521_vm14 = vcmp.eq.s32.totalorder %v3376_v12, %v4036_v27  ;;  %vm1518_vm11 = vcmp.eq.s32.totalorder %v3370_v60, %v4036_v27  ;;  %vm1515_vm10 = vcmp.eq.s32.totalorder %v3367_v61, %v4036_v27 }
 0x1da   : > { %v1951_v15 = vsel %vm1480_vm7, %v3833_v23, %v1949_v51  ;;  %vm1536_vm7 = vcmp.eq.s32.totalorder %v4581_v32, %v4036_v27  ;;  %v4099_v23 = vld [vmem:[%s4672_s2 + $0x18] sm:$0xff] }
 0x1db   : > { %2451 = vmatpush.msk.msrb.mxu3 %vm1553_vm6, %v2740_v5  ;;  %v1952_v16 = vsel %vm1482_vm2, %v1951_v15, %v1950_v14  ;;  %vm4673_vm2 = vcmask 523264   ;;  %vm1512_vm6 = vcmp.eq.s32.totalorder %v3364_v11, %v4036_v27  ;;  %v1897_v15 = vld [vmem:[#allocation3 + $0x28] sm:$0xff] }
 0x1dc   : > { %1953 = vst.msk [vmem:[%s4068_s12] sm:$0x7] %vm3997_vm8, %v1952_v16  ;;  %vm1533_vm8 = vcmp.eq.s32.totalorder %v4580_v25, %v4036_v27  ;;  %vm4674_vm3 = vmmov %vm4673_vm2 }
 0x1dd   : > { %2452 = vmatpush.msk.msrb.mxu3 %vm1550_vm4, %v2740_v5  ;;  %vm4675_vm4 = vmmov %vm4673_vm2 }
 0x1de   : > { %1743 = vmatmul.f32.gmra.mxu3 %v4042_v10  ;;  %1737 = vmatmul.f32.gmra.mxu0 %v4047_v42 }
 0x1df   : > { %2453 = vmatpush.msk.msrb.mxu3 %vm1547_vm9, %v2740_v5  ;;  %vm1509_vm9 = vcmp.eq.s32.totalorder %v3357_v28, %v4036_v27 }
 0x1e1   : > { %2454 = vmatpush.msk.msrb.mxu3 %vm1544_vm5, %v2740_v5  ;;  %vm1506_vm5 = vcmp.eq.s32.totalorder %v3348_v48, %v4036_v27 }
 0x1e3   : > { %2455 = vmatpush.msk.msrb.mxu3 %vm1541_vm1, %v2740_v5  ;;  %vm1503_vm1 = vcmp.eq.s32.totalorder %v3345_v58, %v4036_v27 }
 0x1e5   : > { %2456 = vmatpush.msk.msrb.mxu3 %vm1538_vm12, %v2740_v5  ;;  %vm1500_vm12 = vcmp.eq.s32.totalorder %v3342_v29, %v4036_v27 }
 0x1e6   : > { %2457 = vmatmul.msk.f32.vlgmr.msrb.gmra.mxu3 %vm4673_vm2, %v4079_v13 }
 0x1e7   : > { %2461 = vmatpush.msk.msra.mxu3 %vm1536_vm7, %v2740_v5  ;;  %vm4676_vm7 = vmmov %vm4673_vm2  ;;  %vm1497_vm2 = vcmp.eq.s32.totalorder %v3339_v30, %v4036_v27 }
 0x1e9   : > { %2462 = vmatpush.msk.msra.mxu3 %vm1533_vm8, %v2740_v5  ;;  %vm1494_vm8 = vcmp.eq.s32.totalorder %v3336_v59, %v4036_v27 }
 0x1eb   : > { %2463 = vmatpush.msk.msra.mxu3 %vm1530_vm13, %v2740_v5  ;;  %vm1491_vm13 = vcmp.eq.s32.totalorder %v3317_v46, %v4036_v27 }
 0x1ed   : > { %2464 = vmatpush.msk.msra.mxu3 %vm1527_vm15, %v2740_v5  ;;  %vm1560_vm15 = vcmp.eq.s32.totalorder %v3450_v20, %v4036_v27 }
 0x1ee   : > { %2458 = vmatmul.msk.f32.gmra.mxu3 %vm4674_vm3, %v4099_v23  ;;  %vm1554_vm3 = vcmp.eq.s32.totalorder %v4667_v34, %v4036_v27 }
 0x1ef   : > { %2465 = vmatpush.msk.msra.mxu3 %vm1524_vm0, %v2740_v5  ;;  %vm1557_vm0 = vcmp.eq.s32.totalorder %v4668_v6, %v4036_v27 }
 0x1f1   : > { %2466 = vmatpush.msk.msra.mxu3 %vm1521_vm14, %v2740_v5  ;;  %vm1551_vm14 = vcmp.eq.s32.totalorder %v3441_v63, %v4036_v27 }
 0x1f3   : > { %2467 = vmatpush.msk.msra.mxu3 %vm1518_vm11, %v2740_v5  ;;  %vm1548_vm11 = vcmp.eq.s32.totalorder %v3435_v50, %v4036_v27 }
 0x1f5   : > { %2468 = vmatpush.msk.msra.mxu3 %vm1515_vm10, %v2740_v5  ;;  %vm1545_vm10 = vcmp.eq.s32.totalorder %v3418_v0, %v4036_v27 }
 0x1f6   : > { %2459 = vmatmul.msk.f32.gmra.mxu3 %vm4675_vm4, %v4118_v8  ;;  %vm1539_vm4 = vcmp.eq.s32.totalorder %v4582_v38, %v4036_v27 }
 0x1f7   : > { %2469 = vmatpush.msk.msra.mxu3 %vm1512_vm6, %v2740_v5  ;;  %vm1542_vm6 = vcmp.eq.s32.totalorder %v4583_v62, %v4036_v27 }
 0x1f9   : > { %2470 = vmatpush.msk.msra.mxu3 %vm1509_vm9, %v2740_v5  ;;  %vm1537_vm9 = vcmp.eq.s32.totalorder %v4581_v32, %v4032_v1  ;;  %v1901_v32 = vld [vmem:[#allocation3 + $0x48] sm:$0xff] }
 0x1fb   : > { %2471 = vmatpush.msk.msra.mxu3 %vm1506_vm5, %v2740_v5  ;;  %vm1534_vm5 = vcmp.eq.s32.totalorder %v4580_v25, %v4032_v1 }
 0x1fd   : > { %2472 = vmatpush.msk.msra.mxu3 %vm1503_vm1, %v2740_v5  ;;  %vm1531_vm1 = vcmp.eq.s32.totalorder %v3388_v53, %v4032_v1 }
 0x1fe   : > { %2460 = vmatmul.msk.f32.gmra.mxu3 %vm4676_vm7, %v4137_v7  ;;  %vm1525_vm7 = vcmp.eq.s32.totalorder %v3379_v9, %v4032_v1 }
 0x1ff   : > { %2473 = vmatpush.msk.msra.mxu3 %vm1500_vm12, %v2740_v5  ;;  %vm1528_vm12 = vcmp.eq.s32.totalorder %v3382_v35, %v4032_v1  ;;  %v1898_v35 = vld [vmem:[#allocation3 + $0x30] sm:$0xff] }
 0x201   : > { %2474 = vmatpush.msk.msra.mxu3 %vm1497_vm2, %v2740_v5  ;;  %vm1522_vm2 = vcmp.eq.s32.totalorder %v3376_v12, %v4032_v1 }
 0x203   : > { %2475 = vmatpush.msk.msra.mxu3 %vm1494_vm8, %v2740_v5  ;;  %vm1519_vm8 = vcmp.eq.s32.totalorder %v3370_v60, %v4032_v1 }
 0x205   : > { %2476 = vmatpush.msk.msra.mxu3 %vm1491_vm13, %v2740_v5  ;;  %vm1516_vm13 = vcmp.eq.s32.totalorder %v3367_v61, %v4032_v1  ;;  %v1895_v61 = vld [vmem:[#allocation3 + $0x18] sm:$0xff] }
 0x206   : > { %1792 = vmatmul.f32.vlgmr.msra.gmra.mxu3 %v4015_v36 }
 0x207   : > { %2477 = vmatpush.msk.msrb.mxu3 %vm1560_vm15, %v2740_v5  ;;  %vm1513_vm15 = vcmp.eq.s32.totalorder %v3364_v11, %v4032_v1 }
 0x209   : > { %2478 = vmatpush.msk.msrb.mxu3 %vm1557_vm0, %v2740_v5  ;;  %vm1510_vm0 = vcmp.eq.s32.totalorder %v3357_v28, %v4032_v1 }
 0x20b   : > { %2479 = vmatpush.msk.msrb.mxu3 %vm1554_vm3, %v2740_v5  ;;  %vm4677_vm3 = vcmask 523264  }
 0x20d   : > { %2480 = vmatpush.msk.msrb.mxu3 %vm1551_vm14, %v2740_v5  ;;  %vm1507_vm14 = vcmp.eq.s32.totalorder %v3348_v48, %v4032_v1 }
 0x20e   : > { %1795 = vmatmul.f32.gmra.mxu3 %v4047_v42 }
 0x20f   : > { %2481 = vmatpush.msk.msrb.mxu3 %vm1548_vm11, %v2740_v5  ;;  %vm1504_vm11 = vcmp.eq.s32.totalorder %v3345_v58, %v4032_v1  ;;  %v1892_v58 = vld [vmem:[#allocation3] sm:$0xff] }
 0x211   : > { %2482 = vmatpush.msk.msrb.mxu3 %vm1545_vm10, %v2740_v5  ;;  %vm1501_vm10 = vcmp.eq.s32.totalorder %v3342_v29, %v4032_v1 }
 0x213   : > { %2483 = vmatpush.msk.msrb.mxu3 %vm1542_vm6, %v2740_v5  ;;  %vm1498_vm6 = vcmp.eq.s32.totalorder %v3339_v30, %v4032_v1 }
 0x215   : > { %2484 = vmatpush.msk.msrb.mxu3 %vm1539_vm4, %v2740_v5  ;;  %vm4678_vm4 = vmmov %vm4677_vm3 }
 0x216   : > { %1798 = vmatmul.f32.gmra.mxu3 %v4010_v39 }
 0x217   : > { %2489 = vmatpush.msk.msra.mxu3 %vm1537_vm9, %v2740_v5  ;;  %vm1495_vm9 = vcmp.eq.s32.totalorder %v3336_v59, %v4032_v1  ;;  %v2741_v59 = vmov 1  }
 0x218   : > { %v4265_v30 = vperm.slane %v2741_v59, 0  ;;  %v2619_v59 = vld [vmem:[%s2848_s19 + $0x20] sm:$0xff] }
 0x219   : > { %2490 = vmatpush.msk.msra.mxu3 %vm1534_vm5, %v2740_v5  ;;  %vm1492_vm5 = vcmp.eq.s32.totalorder %v3317_v46, %v4032_v1 }
 0x21b   : > { %2491 = vmatpush.msk.msra.mxu3 %vm1531_vm1, %v2740_v5  ;;  %vm1561_vm1 = vcmp.eq.s32.totalorder %v3450_v20, %v4032_v1 }
 0x21d   : > { %2492 = vmatpush.msk.msra.mxu3 %vm1528_vm12, %v2740_v5  ;;  %vm1558_vm12 = vcmp.eq.s32.totalorder %v4668_v6, %v4032_v1  ;;  %v2616_v6 = vld [vmem:[%s2848_s19 + $0x8] sm:$0xff] }
 0x21e   : > { %1801 = vmatmul.f32.gmra.mxu3 %v4042_v10 }
 0x21f   : > { %2493 = vmatpush.msk.msra.mxu3 %vm1525_vm7, %v2740_v5  ;;  %vm4679_vm7 = vmmov %vm4677_vm3 }
 0x221   : > { %2494 = vmatpush.msk.msra.mxu3 %vm1522_vm2, %v2740_v5  ;;  %vm1555_vm2 = vcmp.eq.s32.totalorder %v4667_v34, %v4032_v1 }
 0x223   : > { %2495 = vmatpush.msk.msra.mxu3 %vm1519_vm8, %v2740_v5  ;;  %vm1552_vm8 = vcmp.eq.s32.totalorder %v3441_v63, %v4032_v1 }
 0x225   : > { %2496 = vmatpush.msk.msra.mxu3 %vm1516_vm13, %v2740_v5  ;;  %vm1549_vm13 = vcmp.eq.s32.totalorder %v3435_v50, %v4032_v1 }
 0x226   : > { %2485 = vmatmul.msk.f32.vlgmr.msrb.gmra.mxu3 %vm4677_vm3, %v4079_v13 }
 0x227   : > { %2497 = vmatpush.msk.msra.mxu3 %vm1513_vm15, %v2740_v5  ;;  %vm1546_vm15 = vcmp.eq.s32.totalorder %v3418_v0, %v4032_v1 }
 0x229   : > { %2498 = vmatpush.msk.msra.mxu3 %vm1510_vm0, %v2740_v5  ;;  %vm4680_vm0 = vmmov %vm4677_vm3  ;;  %vm1543_vm3 = vcmp.eq.s32.totalorder %v4583_v62, %v4032_v1 }
 0x22b   : > { %2499 = vmatpush.msk.msra.mxu3 %vm1507_vm14, %v2740_v5  ;;  %vm1540_vm14 = vcmp.eq.s32.totalorder %v4582_v38, %v4032_v1 }
 0x22d   : > { %2500 = vmatpush.msk.msra.mxu3 %vm1504_vm11, %v2740_v5  ;;  %vm4681_vm11 = vmmov %vm4680_vm0 }
 0x22e   : > { %2486 = vmatmul.msk.f32.gmra.mxu3 %vm4678_vm4, %v4099_v23  ;;  %vm4683_vm4 = vmmov %vm4680_vm0 }
 0x22f   : > { %2501 = vmatpush.msk.msra.mxu3 %vm1501_vm10, %v2740_v5  ;;  %vm1910_vm10 = vcmp.eq.s32.totalorder %v4265_v30, 1 }
 0x231   : > { %2502 = vmatpush.msk.msra.mxu3 %vm1498_vm6, %v2740_v5  ;;  %vm4682_vm6 = vmmov %vm4680_vm0 }
 0x233   : > { %2503 = vmatpush.msk.msra.mxu3 %vm1495_vm9, %v2740_v5  ;;  %vm4684_vm9 = vmmov %vm4680_vm0 }
 0x235   : > { %2504 = vmatpush.msk.msra.mxu3 %vm1492_vm5, %v2740_v5  ;;  %vm4685_vm5 = vmmov %vm4680_vm0 }
 0x236   : > { %2487 = vmatmul.msk.f32.gmra.mxu3 %vm4679_vm7, %v4118_v8  ;;  %vm4688_vm7 = vmmov %vm4680_vm0 }
 0x237   : > { %2505 = vmatpush.msk.msrb.mxu3 %vm1561_vm1, %v2740_v5  ;;  %vm4686_vm1 = vmmov %vm4680_vm0 }
 0x239   : > { %2506 = vmatpush.msk.msrb.mxu3 %vm1558_vm12, %v2740_v5  ;;  %vm4687_vm12 = vmmov %vm4680_vm0 }
 0x23b   : > { %2507 = vmatpush.msk.msrb.mxu3 %vm1555_vm2, %v2740_v5  ;;  %vm4689_vm2 = vmmov %vm4680_vm0 }
 0x23d   : > { %2508 = vmatpush.msk.msrb.mxu3 %vm1552_vm8, %v2740_v5  ;;  %vm4690_vm8 = vmmov %vm4680_vm0 }
 0x23e   : > { %2488 = vmatmul.msk.f32.gmra.mxu3 %vm4680_vm0, %v4137_v7 }
 0x23f   : > { %2509 = vmatpush.msk.msrb.mxu3 %vm1549_vm13, %v2740_v5  ;;  %vm4691_vm13 = vmmov %vm4680_vm0 }
 0x241   : > { %2510 = vmatpush.msk.msrb.mxu3 %vm1546_vm15, %v2740_v5  ;;  %vm4692_vm15 = vmmov %vm4680_vm0 }
 0x243   : > { %2511 = vmatpush.msk.msrb.mxu3 %vm1543_vm3, %v2740_v5  ;;  %vm4693_vm3 = vmmov %vm4680_vm0 }
 0x245   : > { %2512 = vmatpush.msk.msrb.mxu3 %vm1540_vm14, %v2740_v5  ;;  %vm4694_vm14 = vmmov %vm4680_vm0 }
 0x246   : > { %1850 = vmatmul.f32.vlgmr.msra.gmra.mxu3 %v4015_v36 }
 0x24e   : > { %1853 = vmatmul.f32.gmra.mxu3 %v4047_v42 }
 0x253   : > { %v1735_v46 = vpop.f32.mrf.mxu0 }
 0x256   : > { %1856 = vmatmul.f32.gmra.mxu3 %v4010_v39 }
 0x259   : > { %v1741_v50 = vpop.f32.mrf.mxu3 }
 0x25b   : > { %v1738_v28 = vpop.f32.mrf.mxu0 }
 0x25e   : > { %1859 = vmatmul.f32.gmra.mxu3 %v4042_v10  ;;  %v1894_v10 = vld [vmem:[#allocation3 + $0x10] sm:$0xff] }
 0x261   : > { %v1744_v53 = vpop.f32.mrf.mxu3 }
 0x266   : > { %2513 = vmatmul.msk.f32.vlgmr.msrb.gmra.mxu3 %vm4681_vm11, %v4079_v13  ;;  %vm4695_vm11 = vmmov %vm4680_vm0 }
 0x269   : > { %v1764_v29 = vpop.f32.mrf.mxu3 }
 0x26a   : > { %v1765_v48 = vadd.f32 %v1764_v29, %v1735_v46 }
 0x26c   : > { %v1913_v0 = vsel %vm1910_vm10, %v1765_v48, %v1892_v58  ;;  %v1900_v48 = vld [vmem:[#allocation3 + $0x40] sm:$0xff] }
 0x26d   : > { %1925 = vst [vmem:[#allocation3] sm:$0xff] %v1913_v0  ;;  %v1993_v40 = vsub.f32 %v2615_v24, %v1913_v0 }
 0x26e   : > { %1969 = vst [vmem:[%s4273_s11] sm:$0xff] %v1913_v0  ;;  %2514 = vmatmul.msk.f32.gmra.mxu3 %vm4682_vm6, %v4099_v23 }
 0x26f   : > { %v2005_v45 = vmul.f32 %v1993_v40, %v1993_v40 }
 0x271   : > { %v1767_v11 = vpop.f32.mrf.mxu3 }
 0x272   : > { %v1768_v60 = vadd.f32 %v1767_v11, %v1738_v28 }
 0x274   : > { %v4280_v12 = vsel %vm1910_vm10, %v1768_v60, %v1895_v61 }
 0x275   : > { %1928 = vst [vmem:[#allocation3 + $0x18] sm:$0xff] %v4280_v12 }
 0x276   : > { %1972 = vst [vmem:[%s4273_s11 + $0x18] sm:$0xff] %v4280_v12  ;;  %2515 = vmatmul.msk.f32.gmra.mxu3 %vm4683_vm4, %v4118_v8  ;;  %v2617_v8 = vld [vmem:[%s2848_s19 + $0x10] sm:$0xff] }
 0x279   : > { %v1770_v9 = vpop.f32.mrf.mxu3 }
 0x27a   : > { %v1771_v63 = vadd.f32 %v1770_v9, %v1741_v50  ;;  %v2618_v50 = vld [vmem:[%s2848_s19 + $0x18] sm:$0xff] }
 0x27c   : > { %v4289_v20 = vsel %vm1910_vm10, %v1771_v63, %v1898_v35 }
 0x27d   : > { %1931 = vst [vmem:[#allocation3 + $0x30] sm:$0xff] %v4289_v20 }
 0x27e   : > { %1975 = vst [vmem:[%s4273_s11 + $0x30] sm:$0xff] %v4289_v20  ;;  %2516 = vmatmul.msk.f32.gmra.mxu3 %vm4684_vm9, %v4137_v7 }
 0x281   : > { %v1773_v25 = vpop.f32.mrf.mxu3 }
 0x282   : > { %v1774_v38 = vadd.f32 %v1773_v25, %v1744_v53  ;;  %v1996_v53 = vsub.f32 %v2618_v50, %v4280_v12  ;;  %v2620_v12 = vld [vmem:[%s2848_s19 + $0x28] sm:$0xff] }
 0x284   : > { %v4298_v62 = vsel %vm1910_vm10, %v1774_v38, %v1901_v32  ;;  %v2008_v11 = vmul.f32 %v1996_v53, %v1996_v53  ;;  %v2621_v38 = vld [vmem:[%s2848_s19 + $0x30] sm:$0xff] }
 0x285   : > { %1934 = vst [vmem:[#allocation3 + $0x48] sm:$0xff] %v4298_v62 }
 0x286   : > { %1978 = vst [vmem:[%s4273_s11 + $0x48] sm:$0xff] %v4298_v62 }
 0x289   : > { %v1793_v5 = vpop.f32.mrf.mxu3 }
 0x291   : > { %v1796_v2 = vpop.f32.mrf.mxu3 }
 0x299   : > { %v1799_v18 = vpop.f32.mrf.mxu3 }
 0x2a1   : > { %v1802_v55 = vpop.f32.mrf.mxu3 }
 0x2a9   : > { %v1822_v33 = vpop.f32.mrf.mxu3 }
 0x2aa   : > { %v1823_v34 = vadd.f32 %v1822_v33, %v1793_v5  ;;  %v1999_v5 = vsub.f32 %v2621_v38, %v4289_v20  ;;  %v2622_v33 = vld [vmem:[%s2848_s19 + $0x38] sm:$0xff] }
 0x2ac   : > { %v1914_v31 = vsel %vm1910_vm10, %v1823_v34, %v1893_v3  ;;  %v2011_v40 = vmul.f32 %v1999_v5, %v1999_v5 }
 0x2ad   : > { %1926 = vst [vmem:[#allocation3 + $0x8] sm:$0xff] %v1914_v31  ;;  %v1994_v22 = vsub.f32 %v2616_v6, %v1914_v31 }
 0x2ae   : > { %1970 = vst [vmem:[%s4273_s11 + $0x8] sm:$0xff] %v1914_v31 }
 0x2af   : > { %v2006_v47 = vmul.f32 %v1994_v22, %v1994_v22 }
 0x2b1   : > { %v1825_v26 = vpop.f32.mrf.mxu3  ;;  %v2017_v17 = vadd.f32 %v2006_v47, %v2005_v45  ;;  %v2623_v45 = vld [vmem:[%s2848_s19 + $0x40] sm:$0xff] }
 0x2b2   : > { %v1826_v19 = vadd.f32 %v1825_v26, %v1796_v2 }
 0x2b4   : > { %v1917_v52 = vsel %vm1910_vm10, %v1826_v19, %v1896_v43  ;;  %v2624_v43 = vld [vmem:[%s2848_s19 + $0x48] sm:$0xff] }
 0x2b5   : > { %1929 = vst [vmem:[#allocation3 + $0x20] sm:$0xff] %v1917_v52  ;;  %v1997_v29 = vsub.f32 %v2619_v59, %v1917_v52 }
 0x2b6   : > { %1973 = vst [vmem:[%s4273_s11 + $0x20] sm:$0xff] %v1917_v52 }
 0x2b7   : > { %v2009_v9 = vmul.f32 %v1997_v29, %v1997_v29 }
 0x2b9   : > { %v1828_v44 = vpop.f32.mrf.mxu3 }
 0x2ba   : > { %v1829_v37 = vadd.f32 %v1828_v44, %v1799_v18  ;;  %v2625_v44 = vld [vmem:[%s2848_s19 + $0x50] sm:$0xff] }
 0x2bc   : > { %v1920_v49 = vsel %vm1910_vm10, %v1829_v37, %v1899_v21 }
 0x2bd   : > { %1932 = vst [vmem:[#allocation3 + $0x38] sm:$0xff] %v1920_v49  ;;  %v2000_v3 = vsub.f32 %v2622_v33, %v1920_v49 }
 0x2be   : > { %1976 = vst [vmem:[%s4273_s11 + $0x38] sm:$0xff] %v1920_v49 }
 0x2bf   : > { %v2012_v47 = vmul.f32 %v2000_v3, %v2000_v3 }
 0x2c1   : > { %v1831_v54 = vpop.f32.mrf.mxu3 }
 0x2c2   : > { %v1832_v41 = vadd.f32 %v1831_v54, %v1802_v55  ;;  %v1903_v55 = vld [vmem:[#allocation3 + $0x58] sm:$0xff] }
 0x2c4   : > { %v4316_v4 = vsel %vm1910_vm10, %v1832_v41, %v1902_v56 }
 0x2c5   : > { %1935 = vst [vmem:[#allocation3 + $0x50] sm:$0xff] %v4316_v4  ;;  %v2003_v30 = vsub.f32 %v2625_v44, %v4316_v4 }
 0x2c6   : > { %1979 = vst [vmem:[%s4273_s11 + $0x50] sm:$0xff] %v4316_v4 }
 0x2c7   : > { %v2015_v54 = vmul.f32 %v2003_v30, %v2003_v30 }
 0x2c9   : > { %v1851_v39 = vpop.f32.mrf.mxu3 }
 0x2d1   : > { %v1854_v36 = vpop.f32.mrf.mxu3 }
 0x2d9   : > { %v1857_v57 = vpop.f32.mrf.mxu3 }
 0x2e1   : > { %v1860_v1 = vpop.f32.mrf.mxu3 }
 0x2e9   : > { %v1880_v27 = vpop.f32.mrf.mxu3 }
 0x2ea   : > { %v1881_v42 = vadd.f32 %v1880_v27, %v1851_v39  ;;  %v2626_v39 = vld [vmem:[%s2848_s19 + $0x58] sm:$0xff]  ;;  %s2643_s19 = scalar_lea.hbm %s2642_s30, 96 }
 0x2eb   : > { %p2644_p12 = scmp.ne.s32.totalorder %s2642_s30, %s2643_s19  ;;  %p2649_p2 = scmp.lt.s32.totalorder %s2647_s1, %s2643_s19 }
 0x2ec   : > { %v1915_v14 = vsel %vm1910_vm10, %v1881_v42, %v1894_v10 }
 0x2ed   : > { %1927 = vst.msk [vmem:[#allocation3 + $0x10] sm:$0xff] %vm4685_vm5, %v1915_v14  ;;  %p2645_p13 = pnand %p2644_p12, %p2819_p4  ;;  %p2650_p3 = por %p2649_p2, %p2648_p1 }
 0x2ef   : > { %p2646_p0 = pneg %p2645_p13 }
 0x2f1   : > { %v1883_v51 = vpop.f32.mrf.mxu3  ;;  %p2651_p5 = pnand %p2650_p3, %p2646_p0 }
 0x2f2   : > { %v1884_v16 = vadd.f32 %v1883_v51, %v1854_v36 }
 0x2f4   : > { %v1959_v13 = vld [vmem:[#allocation3 + $0x10] sm:$0xff]  ;;  %v1918_v23 = vsel %vm1910_vm10, %v1884_v16, %v1897_v15 }
 0x2f5   : > { %1971 = vst.msk [vmem:[%s4273_s11 + $0x10] sm:$0xff] %vm4686_vm1, %v1959_v13  ;;  %v1995_v7 = vsub.f32 %v2617_v8, %v1959_v13 }
 0x2f6   : > { %1930 = vst.msk [vmem:[#allocation3 + $0x28] sm:$0xff] %vm4687_vm12, %v1918_v23 }
 0x2f7   : > { %v2007_v46 = vmul.f32 %v1995_v7, %v1995_v7 }
 0x2f9   : > { %v1886_v58 = vpop.f32.mrf.mxu3  ;;  %v2018_v0 = vsel %vm4688_vm7, %v2007_v46, 0.0 }
 0x2fa   : > { %v1887_v28 = vadd.f32 %v1886_v58, %v1857_v57  ;;  %v2019_v61 = vadd.f32 %v2018_v0, %v2017_v17  ;;  %v2002_v17 = vsub.f32 %v2624_v43, %v4298_v62 }
 0x2fc   : > { %v1921_v60 = vsel %vm1910_vm10, %v1887_v28, %v1900_v48  ;;  %v2020_v35 = vadd.f32 %v2019_v61, %v2008_v11  ;;  %v2014_v37 = vmul.f32 %v2002_v17, %v2002_v17 }
 0x2fd   : > { %v1962_v63 = vld [vmem:[#allocation3 + $0x28] sm:$0xff]  ;;  %1933 = vst.msk [vmem:[#allocation3 + $0x40] sm:$0xff] %vm4689_vm2, %v1921_v60 }
 0x2fe   : > { %1974 = vst.msk [vmem:[%s4273_s11 + $0x28] sm:$0xff] %vm4690_vm8, %v1962_v63  ;;  %v1998_v25 = vsub.f32 %v2620_v12, %v1962_v63  ;;  %v2021_v32 = vadd.f32 %v2020_v35, %v2009_v9 }
 0x300   : > { %v2010_v2 = vmul.f32 %v1998_v25, %v1998_v25 }
 0x301   : > { %v1889_v18 = vpop.f32.mrf.mxu3 }
 0x302   : > { %v1890_v34 = vadd.f32 %v1889_v18, %v1860_v1  ;;  %v2022_v24 = vsel %vm4691_vm13, %v2010_v2, 0.0 }
 0x303   : > { %v2023_v31 = vadd.f32 %v2022_v24, %v2021_v32 }
 0x304   : > { %v1965_v6 = vld [vmem:[#allocation3 + $0x40] sm:$0xff]  ;;  %v1924_v22 = vsel %vm1910_vm10, %v1890_v34, %v1903_v55 }
 0x305   : > { %1977 = vst.msk [vmem:[%s4273_s11 + $0x40] sm:$0xff] %vm4692_vm15, %v1965_v6  ;;  %v2001_v20 = vsub.f32 %v2623_v45, %v1965_v6  ;;  %v2024_v26 = vadd.f32 %v2023_v31, %v2011_v40 }
 0x306   : > { %1936 = vst.msk [vmem:[#allocation3 + $0x58] sm:$0xff] %vm4680_vm0, %v1924_v22 }
 0x307   : > { %v2013_v19 = vmul.f32 %v2001_v20, %v2001_v20  ;;  %v2025_v52 = vadd.f32 %v2024_v26, %v2012_v47 }
 0x309   : > { %v2026_v21 = vsel %vm4693_vm3, %v2013_v19, 0.0 }
 0x30a   : > { %v2027_v49 = vadd.f32 %v2026_v21, %v2025_v52 }
 0x30c   : > { %v2028_v56 = vadd.f32 %v2027_v49, %v2014_v37 }
 0x30d   : > { %v1968_v41 = vld [vmem:[#allocation3 + $0x58] sm:$0xff] }
 0x30e   : > { %1980 = vst.msk [vmem:[%s4273_s11 + $0x58] sm:$0xff] %vm4694_vm14, %v1968_v41  ;;  %v2004_v36 = vsub.f32 %v2626_v39, %v1968_v41  ;;  %v2029_v62 = vadd.f32 %v2028_v56, %v2015_v54 }
 0x310   : > { %v2016_v57 = vmul.f32 %v2004_v36, %v2004_v36 }
 0x312   : > { %v2030_v1 = vsel %vm4695_vm11, %v2016_v57, 0.0 }
 0x313   : > { %v2031_v27 = vadd.f32 %v2030_v1, %v2029_v62 }
 0x315   : > { %2032 = vadd.xlane.f32.xlu0 %v2031_v27 }
 0x316   : > { %2654 = shalt.err (!%p2651_p5)
}
 0x317   : > { %s2742_s13 = smov 384   ;;  %s2743_s16 = smov 24  }
 0x318   : > { %2547 = dma.vmem_to_hbm [thread:$0]  (%p2819_p4), %s2071_s14, 1536, %s2073_s27, %s2045_s28, %s2742_s13, %s2742_s13, %s2743_s16  }
 0x319   : > { %s2546_s17 = smul.u32 3, %s2729_s24  ;;  %s2089_s0 = sshll.u32 %s4068_s12, 4  ;;  %s2090_s0 = int_to_ptr.vmem [resolvable:$true] %s2089_s0 }
 0x31a   : > { %s2050_s30 = scalar_lea.sflag [#allocation7], %s4029_s20  ;;  %s2675_s24 = scalar_lea.hbm %s4422_s5, 6 }
 0x31b   : > { %s2087_s2 = scalar_lea.hbm %s4422_s5, %s2546_s17 }
 0x31c   : > { %s2091_s1 = sshll.u32 %s2087_s2, 4  ;;  %s2092_s1 = int_to_ptr.hbm [resolvable:$true] %s2091_s1 }
 0x31d   : > { %s2669_s19 = sshra.s32 %s2092_s1, 4  ;;  %s2670_s19 = int_to_ptr.hbm [resolvable:$true] %s2669_s19 }
 0x31e   : > { %s2671_s11 = scalar_lea.hbm %s2670_s19, 3  ;;  %p2676_p10 = scmp.lt.s32.totalorder %s2670_s19, %s4422_s5 }
 0x31f   : > { %p2672_p6 = scmp.ne.s32.totalorder %s2670_s19, %s2671_s11  ;;  %p2677_p11 = scmp.lt.s32.totalorder %s2675_s24, %s2671_s11 }
 0x321   : > { %p2673_p7 = pnand %p2672_p6, %p2819_p4  ;;  %p2678_p12 = por %p2677_p11, %p2676_p10 }
 0x323   : > { %p2674_p9 = pneg %p2673_p7 }
 0x325   : > { %p2679_p13 = pnand %p2678_p12, %p2674_p9 }
 0x327   : > { %2682 = shalt.err (!%p2679_p13)
}
 0x328   : > { %2548 = dma.vmem_to_hbm [thread:$0]  (%p2819_p4), %s2090_s0, 48, %s2092_s1, %s2050_s30   ;;  %vm2042_vm10 = vcmask 0  }
 0x329   : > { %s383_s20 = scalar_lea.vmem %s4423_s6, %s2842_s15 }
 0x388   : > { %v2033_v4 = vpop.xlane.xlu0 %2032 }
 0x389   : > { %v2034_v10 = vrot.slane %v2033_v4, 4 }
 0x38b   : > { %v2035_v42 = vadd.f32 %v2034_v10, %v2033_v4 }
 0x38d   : > { %v2036_v14 = vrot.slane %v2035_v42, 2 }
 0x38f   : > { %v2037_v51 = vadd.f32 %v2036_v14, %v2035_v42 }
 0x391   : > { %v2038_v15 = vrot.slane %v2037_v51, 1 }
 0x393   : > { %v2039_v16 = vadd.f32 %v2038_v15, %v2037_v51 }
 0x395   : > { %2543 = vpush %v2039_v16 }
 0x3c6   : > { %s2544_s27 = spop %2543 }
 0x3c7   : > { %v2041_v13 = vstv %s2544_s27 }
 0x3c8   : > { %2043 = vst.msk [vmem:[%s383_s20] sm:$0x1] %vm2042_vm10, %v2041_v13 }
 0x3c9 PF: > { %p2558_p4 = scmp.ge.s32.totalorder %s2737_s26, 2  ;;  %s2106_s7 = sand.u32 1, %s2717_s21  }
 0x3ca   : > { %s2107_s28 = scalar_lea.sflag [#allocation5], %s2106_s7 }
 0x3cb   : > { %p2552_p0 = pnand %p2558_p4, %p2826_p8 }
 0x3cd   : > { %p2553_p1 = pneg %p2552_p0 }
 0x3cf   : > { %2708 = dma.done.wait (%p2553_p1), %s2107_s28, 1536  }
 0x3d0   : > { %2710 = vsyncadd (%p2553_p1), %s2107_s28, 4294965760  ;;  %s2117_s13 = scalar_lea.sflag [#allocation7], %s2106_s7 }
 0x3d1   : > { %2712 = dma.done.wait (%p2553_p1), %s2117_s13, 48  }
 0x3d2   : > { %2714 = vsyncadd (%p2553_p1), %s2117_s13, 4294967248  ;;  %s23_s26 = sadd.s32 1, %s2737_s26   ;;  %s4697_s21 = smov %s2721_s22 }
 0x3d3   : > { %p20_p2 = scmp.ge.s32.totalorder %s23_s26, 4   ;;  %s4698_s22 = smov %s2725_s23 }
 0x3d4   : > { %s4699_s23 = smov %s2832_s10  ;;  %s4700_s24 = smov %s2733_s25 }
 0x3d5   : > { %s4701_s25 = smov %s4703_s29  ;;  %22 = sbr.rel (!%p20_p2) target bundleno = 12 (0xc), region = 113 }
 0x3da   :  { %2132 = vsyncpa [#allocation5], 1 }
 0x3db   :  { %2134 = vsyncpa [#allocation5 + $0x1], 1 }
 0x3dc   :  { %2135 = vsyncpa [#allocation7], 1 }
 0x3dd   :  { %2137 = vsyncpa [#allocation7 + $0x1], 1 }

</bundles_post_ra>
